<compile_context>
chip_gen: v6e
topology: v6e:2x2x1
jax: 0.10.0
libtpu: 0.0.40
codegen_flags: <defaults>
</compile_context>

<pallas_src>
import math
import jax
import jax.numpy as jnp
from jax.experimental import pallas as pl
from jax.experimental.pallas import tpu as pltpu

DROPOUT_RATE = 0.7
DROPOUT_TYPE = 2
TIMEUNITES = 12
HIDDEN_SIZE = 32


def lstm_masked_kernel(x_ref, wih_ref, whh_ref, bias_ref, mask_ref,
                       wlin_ref, blin_ref, out_ref):
    """Whole masked-LSTM time loop + linear head for one batch block.

    x_ref    : (TB, T)   input sequence block (feature dim of 1 squeezed)
    wih_ref  : (1, 4H)   weight_ih transposed
    whh_ref  : (H, 4H)   weight_hh transposed
    bias_ref : (1, 4H)   b_ih + b_hh
    mask_ref : (1, 4H)   dropout mask (type 2: shared for ih and hh)
    wlin_ref : (1, H)    linear head weight
    blin_ref : (1,)      linear head bias (SMEM scalar)
    out_ref  : (TB, T)   per-step scalar outputs
    """
    Bb, T = x_ref.shape
    H = HIDDEN_SIZE

    # ---- loop-invariant weight prep: computed exactly once ----------------
    # Fold the 0.5 argument scaling of sigmoid(x) = 0.5*tanh(0.5*x) + 0.5 into
    # the i/f/o columns of the masked weights & bias; the g columns keep
    # scale 1.0 (they need a plain tanh).  This lets one tanh over the full
    # (TB, 4H) gate block produce everything needed for all four gates.
    col = jax.lax.broadcasted_iota(jnp.int32, (1, 4 * H), 1)
    is_g = jnp.logical_and(col >= 2 * H, col < 3 * H)
    scale = jnp.where(is_g, 1.0, 0.5).astype(jnp.float32)      # (1, 4H)

    mask = mask_ref[...]                                       # (1, 4H)
    ms = mask * scale                                          # (1, 4H)
    wih_m = wih_ref[...] * ms                                  # (1, 4H)
    whh_m = whh_ref[...] * ms                                  # (H, 4H)
    bias_s = bias_ref[...] * scale                             # (1, 4H)
    wlin = wlin_ref[...]                                       # (1, H)
    blin = blin_ref[0]                                         # scalar (SMEM)

    x = x_ref[...]                                             # (TB, T)

    h = jnp.zeros((Bb, H), dtype=jnp.float32)
    c = jnp.zeros((Bb, H), dtype=jnp.float32)

    # T is small (12) and static -> fully unrolled, static slices only.
    # Per step: one MXU matmul, one broadcast-mul+add (input contribution),
    # ONE tanh over (TB,4H), one tanh over (TB,H), and the elementwise state
    # update + head reduce.  No Python-list live ranges survive across steps.
    for t in range(T):
        gates = (jnp.dot(h, whh_m, preferred_element_type=jnp.float32)
                 + x[:, t:t + 1] * wih_m + bias_s)             # (TB, 4H) pre-scaled
        th = jnp.tanh(gates)                                   # single EUP pass
        i_g = 0.5 * th[:, 0 * H:1 * H] + 0.5                   # sigmoid via tanh
        f_g = 0.5 * th[:, 1 * H:2 * H] + 0.5
        g_g = th[:, 2 * H:3 * H]                               # plain tanh (scale 1)
        o_g = 0.5 * th[:, 3 * H:4 * H] + 0.5

        c = f_g * c + i_g * g_g
        h = o_g * jnp.tanh(c)

        # Linear head: VPU mul + lane reduce, stored straight into the VMEM
        # output tile at static column t (no hs list, no epilogue concat).
        out_ref[:, t:t + 1] = jnp.sum(h * wlin, axis=1, keepdims=True) + blin


def lstm_model_forward(x, params, mask1):
    """x: (B, T, 1) float32 -> (B, T) float32, matching LSTMModel.forward."""
    B, T, F = x.shape
    assert F == 1
    H = HIDDEN_SIZE

    # Batch block: sublane-aligned, never larger than 32 (keeps gate vregs
    # well inside the 64-vreg file; B>32 gives >=2 grid blocks so the batch
    # axis can split across TensorCores).
    if B <= 8:
        TB = 8
    elif B <= 16:
        TB = 16
    else:
        TB = 32
    B_pad = ((B + TB - 1) // TB) * TB

    x_bt = x[..., 0].astype(jnp.float32)                            # (B, T)
    if B_pad != B:
        x_bt = jnp.pad(x_bt, ((0, B_pad - B), (0, 0)))

    wih_t = params["w_ih"].T.astype(jnp.float32)                    # (1, 4H)
    whh_t = params["w_hh"].T.astype(jnp.float32)                    # (H, 4H)
    bias = (params["b_ih"] + params["b_hh"]).reshape(1, 4 * H).astype(jnp.float32)
    mask_row = mask1.reshape(1, 4 * H).astype(jnp.float32)          # (1, 4H)
    wlin = params["w_lin"].reshape(1, H).astype(jnp.float32)        # (1, H)
    blin = params["b_lin"].reshape(1).astype(jnp.float32)           # (1,)

    def full_spec(shape):
        # Untiled VMEM-resident operand (same block for every grid step).
        return pl.BlockSpec(shape, lambda i: (0, 0))

    out = pl.pallas_call(
        lstm_masked_kernel,
        out_shape=jax.ShapeDtypeStruct((B_pad, T), jnp.float32),
        grid=(B_pad // TB,),
        in_specs=[
            pl.BlockSpec((TB, T), lambda i: (i, 0)),              # x block
            full_spec((1, 4 * H)),                                # w_ih^T
            full_spec((H, 4 * H)),                                # w_hh^T
            full_spec((1, 4 * H)),                                # bias
            full_spec((1, 4 * H)),                                # mask
            full_spec((1, H)),                                    # w_lin
            pl.BlockSpec(memory_space=pltpu.MemorySpace.SMEM),    # b_lin scalar
        ],
        out_specs=pl.BlockSpec((TB, T), lambda i: (i, 0)),
        compiler_params=pltpu.CompilerParams(
            dimension_semantics=(pltpu.PARALLEL,)),
    )(x_bt, wih_t, whh_t, bias, mask_row, wlin, blin)
    return out[:B]                                                  # (B, T)


def reference_forward(x, params, mask1):
    """Pure-JAX reference of the PyTorch forward (dropout type 2)."""
    B, T, _ = x.shape
    H = HIDDEN_SIZE
    w_ih = params["w_ih"] * mask1                       # (4H, 1)
    w_hh = params["w_hh"] * mask1                       # (4H, H) broadcast expand
    b = params["b_ih"] + params["b_hh"]                 # (4H,)
    h = jnp.zeros((B, H), jnp.float32)
    c = jnp.zeros((B, H), jnp.float32)
    outs = []
    for t in range(T):
        x_t = x[:, t, :]                                # (B, 1)
        gates = x_t @ w_ih.T + h @ w_hh.T + b           # (B, 4H)
        i_g = jax.nn.sigmoid(gates[:, 0 * H:1 * H])
        f_g = jax.nn.sigmoid(gates[:, 1 * H:2 * H])
        g_g = jnp.tanh(gates[:, 2 * H:3 * H])
        o_g = jax.nn.sigmoid(gates[:, 3 * H:4 * H])
        c = f_g * c + i_g * g_g
        h = o_g * jnp.tanh(c)
        outs.append(h @ params["w_lin"].T + params["b_lin"])  # (B, 1)
    return jnp.stack(outs, axis=1)[..., 0]              # (B, T)


def init_params(key):
    """Deterministic init matching the PyTorch module's parameter shapes."""
    H = HIDDEN_SIZE
    k = jax.random.split(key, 6)
    s_lstm = 1.0 / math.sqrt(H)   # PyTorch LSTMCell default uniform bound
    s_lin = 1.0 / math.sqrt(H)    # PyTorch Linear default uniform bound
    return {
        "w_ih": jax.random.uniform(k[0], (4 * H, 1), jnp.float32, -s_lstm, s_lstm),
        "w_hh": jax.random.uniform(k[1], (4 * H, H), jnp.float32, -s_lstm, s_lstm),
        "b_ih": jax.random.uniform(k[2], (4 * H,), jnp.float32, -s_lstm, s_lstm),
        "b_hh": jax.random.uniform(k[3], (4 * H,), jnp.float32, -s_lstm, s_lstm),
        "w_lin": jax.random.uniform(k[4], (1, H), jnp.float32, -s_lin, s_lin),
        "b_lin": jax.random.uniform(k[5], (1,), jnp.float32, -s_lin, s_lin),
    }


if __name__ == "__main__":
    key = jax.random.PRNGKey(0)
    k_param, k_mask, k_x = jax.random.split(key, 3)

    B, T, H = 2, TIMEUNITES, HIDDEN_SIZE
    params = init_params(k_param)

    # Dropout type 2 (exactly as in the PyTorch module): single bernoulli mask
    # (4H, 1) with keep-prob DROPOUT_RATE, scaled by 1/DROPOUT_RATE, shared
    # for ih and hh.
    mask1 = (jax.random.bernoulli(k_mask, DROPOUT_RATE, (4 * H, 1))
             .astype(jnp.float32) / DROPOUT_RATE)

    x = jax.random.normal(k_x, (B, T, 1), jnp.float32)

    out = lstm_model_forward(x, params, mask1)
    out = jax.block_until_ready(out)

    ref = reference_forward(x, params, mask1)
    assert out.shape == (B, T), out.shape
    assert jnp.allclose(out, ref, atol=1e-5, rtol=1e-5), (out, ref)

    print("KERNEL_OK")
</pallas_src>

<mosaic_0001>
module attributes {stable_mosaic.version = 11 : i64} {
  func.func @lstm_masked_kernel(%arg0: i32, %arg1: memref<8x12xf32, #tpu.memory_space<vmem>>, %arg2: memref<1x128xf32, #tpu.memory_space<vmem>>, %arg3: memref<32x128xf32, #tpu.memory_space<vmem>>, %arg4: memref<1x128xf32, #tpu.memory_space<vmem>>, %arg5: memref<1x128xf32, #tpu.memory_space<vmem>>, %arg6: memref<1x32xf32, #tpu.memory_space<vmem>>, %arg7: memref<1xf32, #tpu.memory_space<smem>>, %arg8: memref<8x12xf32, #tpu.memory_space<vmem>>) attributes {dimension_semantics = [#tpu.dimension_semantics<parallel>], iteration_bounds = array<i64: 1>, scalar_prefetch = 0 : i64, scratch_operands = 0 : i64, tpu.core_type = #tpu.core_type<tc>, window_params = [{transform_indices = @transform_0, window_bounds = array<i64: 8, 12>}, {pipeline_mode = #tpu.pipeline_mode<synchronous>, transform_indices = @transform_1, window_bounds = array<i64: 1, 128>}, {pipeline_mode = #tpu.pipeline_mode<synchronous>, transform_indices = @transform_2, window_bounds = array<i64: 32, 128>}, {pipeline_mode = #tpu.pipeline_mode<synchronous>, transform_indices = @transform_3, window_bounds = array<i64: 1, 128>}, {pipeline_mode = #tpu.pipeline_mode<synchronous>, transform_indices = @transform_4, window_bounds = array<i64: 1, 128>}, {pipeline_mode = #tpu.pipeline_mode<synchronous>, transform_indices = @transform_5, window_bounds = array<i64: 1, 32>}, {transform_indices = @transform_6, window_bounds = array<i64: 1>}, {transform_indices = @transform_7, window_bounds = array<i64: 8, 12>}]} {
    %0 = tpu.iota {dimensions = array<i32: 1>} : vector<1x128xi32>
    %c64_i32 = arith.constant 64 : i32
    %1 = vector.broadcast %c64_i32 : i32 to vector<1x128xi32>
    %2 = arith.cmpi sge, %0, %1 : vector<1x128xi32>
    %c96_i32 = arith.constant 96 : i32
    %3 = vector.broadcast %c96_i32 : i32 to vector<1x128xi32>
    %4 = arith.cmpi slt, %0, %3 : vector<1x128xi32>
    %5 = arith.andi %2, %4 : vector<1x128xi1>
    %cst = arith.constant 1.000000e+00 : f32
    %cst_0 = arith.constant 5.000000e-01 : f32
    %6 = vector.broadcast %cst : f32 to vector<1x128xf32>
    %7 = vector.broadcast %cst_0 : f32 to vector<1x128xf32>
    %8 = arith.select %5, %6, %7 : vector<1x128xi1>, vector<1x128xf32>
    %c0 = arith.constant 0 : index
    %c0_1 = arith.constant 0 : index
    %9 = vector.load %arg5[%c0, %c0_1] : memref<1x128xf32, #tpu.memory_space<vmem>>, vector<1x128xf32>
    %10 = arith.mulf %9, %8 : vector<1x128xf32>
    %c0_2 = arith.constant 0 : index
    %c0_3 = arith.constant 0 : index
    %11 = vector.load %arg2[%c0_2, %c0_3] : memref<1x128xf32, #tpu.memory_space<vmem>>, vector<1x128xf32>
    %12 = arith.mulf %11, %10 : vector<1x128xf32>
    %c0_4 = arith.constant 0 : index
    %c0_5 = arith.constant 0 : index
    %13 = vector.load %arg3[%c0_4, %c0_5] : memref<32x128xf32, #tpu.memory_space<vmem>>, vector<32x128xf32>
    %14 = vector.broadcast %10 : vector<1x128xf32> to vector<32x128xf32>
    %15 = arith.mulf %13, %14 : vector<32x128xf32>
    %c0_6 = arith.constant 0 : index
    %c0_7 = arith.constant 0 : index
    %16 = vector.load %arg4[%c0_6, %c0_7] : memref<1x128xf32, #tpu.memory_space<vmem>>, vector<1x128xf32>
    %17 = arith.mulf %16, %8 : vector<1x128xf32>
    %c0_8 = arith.constant 0 : index
    %c0_9 = arith.constant 0 : index
    %18 = vector.load %arg6[%c0_8, %c0_9] : memref<1x32xf32, #tpu.memory_space<vmem>>, vector<1x32xf32>
    %c0_10 = arith.constant 0 : index
    %19 = memref.load %arg7[%c0_10] : memref<1xf32, #tpu.memory_space<smem>>
    %c0_11 = arith.constant 0 : index
    %c0_12 = arith.constant 0 : index
    %20 = vector.load %arg1[%c0_11, %c0_12] : memref<8x12xf32, #tpu.memory_space<vmem>>, vector<8x12xf32>
    %cst_13 = arith.constant 0.000000e+00 : f32
    %21 = vector.broadcast %cst_13 : f32 to vector<8x32xf32>
    %cst_14 = arith.constant 0.000000e+00 : f32
    %22 = vector.broadcast %cst_14 : f32 to vector<8x32xf32>
    %cst_15 = arith.constant dense<0.000000e+00> : vector<8x128xf32>
    %23 = tpu.matmul %21, %15, %cst_15 {dimension_numbers = #tpu.dot_dimension_numbers<[1], [0], [0], [1], [0, 0, 1, 1], [], []>} : vector<8x32xf32>, vector<32x128xf32>, vector<8x128xf32> -> vector<8x128xf32>
    %24 = vector.extract_strided_slice %20 {offsets = [0, 0], sizes = [8, 1], strides = [1, 1]} : vector<8x12xf32> to vector<8x1xf32>
    %25 = vector.broadcast %24 : vector<8x1xf32> to vector<8x128xf32>
    %26 = vector.broadcast %12 : vector<1x128xf32> to vector<8x128xf32>
    %27 = arith.mulf %25, %26 : vector<8x128xf32>
    %28 = arith.addf %23, %27 : vector<8x128xf32>
    %29 = vector.broadcast %17 : vector<1x128xf32> to vector<8x128xf32>
    %30 = arith.addf %28, %29 : vector<8x128xf32>
    %31 = math.tanh %30 : vector<8x128xf32>
    %32 = vector.extract_strided_slice %31 {offsets = [0, 0], sizes = [8, 32], strides = [1, 1]} : vector<8x128xf32> to vector<8x32xf32>
    %cst_16 = arith.constant 5.000000e-01 : f32
    %33 = vector.broadcast %cst_16 : f32 to vector<8x32xf32>
    %34 = arith.mulf %33, %32 : vector<8x32xf32>
    %cst_17 = arith.constant 5.000000e-01 : f32
    %35 = vector.broadcast %cst_17 : f32 to vector<8x32xf32>
    %36 = arith.addf %34, %35 : vector<8x32xf32>
    %37 = vector.extract_strided_slice %31 {offsets = [0, 32], sizes = [8, 32], strides = [1, 1]} : vector<8x128xf32> to vector<8x32xf32>
    %cst_18 = arith.constant 5.000000e-01 : f32
    %38 = vector.broadcast %cst_18 : f32 to vector<8x32xf32>
    %39 = arith.mulf %38, %37 : vector<8x32xf32>
    %cst_19 = arith.constant 5.000000e-01 : f32
    %40 = vector.broadcast %cst_19 : f32 to vector<8x32xf32>
    %41 = arith.addf %39, %40 : vector<8x32xf32>
    %42 = vector.extract_strided_slice %31 {offsets = [0, 64], sizes = [8, 32], strides = [1, 1]} : vector<8x128xf32> to vector<8x32xf32>
    %43 = vector.extract_strided_slice %31 {offsets = [0, 96], sizes = [8, 32], strides = [1, 1]} : vector<8x128xf32> to vector<8x32xf32>
    %cst_20 = arith.constant 5.000000e-01 : f32
    %44 = vector.broadcast %cst_20 : f32 to vector<8x32xf32>
    %45 = arith.mulf %44, %43 : vector<8x32xf32>
    %cst_21 = arith.constant 5.000000e-01 : f32
    %46 = vector.broadcast %cst_21 : f32 to vector<8x32xf32>
    %47 = arith.addf %45, %46 : vector<8x32xf32>
    %48 = arith.mulf %41, %22 : vector<8x32xf32>
    %49 = arith.mulf %36, %42 : vector<8x32xf32>
    %50 = arith.addf %48, %49 : vector<8x32xf32>
    %51 = math.tanh %50 : vector<8x32xf32>
    %52 = arith.mulf %47, %51 : vector<8x32xf32>
    %53 = vector.broadcast %18 : vector<1x32xf32> to vector<8x32xf32>
    %54 = arith.mulf %52, %53 : vector<8x32xf32>
    %cst_22 = arith.constant dense<0.000000e+00> : vector<8xf32>
    %55 = vector.multi_reduction <add>, %54, %cst_22 [1] : vector<8x32xf32> to vector<8xf32>
    %56 = vector.shape_cast %55 : vector<8xf32> to vector<8x1xf32>
    %57 = vector.broadcast %19 : f32 to vector<8x1xf32>
    %58 = arith.addf %56, %57 : vector<8x1xf32>
    %c0_23 = arith.constant 0 : index
    %c0_24 = arith.constant 0 : index
    %59 = vector.load %arg8[%c0_23, %c0_24] : memref<8x12xf32, #tpu.memory_space<vmem>>, vector<8x1xf32>
    tpu.vector_store %arg8[%c0_23, %c0_24], %58 {strides = array<i32>} : memref<8x12xf32, #tpu.memory_space<vmem>>, vector<8x1xf32>,
    %cst_25 = arith.constant dense<0.000000e+00> : vector<8x128xf32>
    %60 = tpu.matmul %52, %15, %cst_25 {dimension_numbers = #tpu.dot_dimension_numbers<[1], [0], [0], [1], [0, 0, 1, 1], [], []>} : vector<8x32xf32>, vector<32x128xf32>, vector<8x128xf32> -> vector<8x128xf32>
    %61 = vector.extract_strided_slice %20 {offsets = [0, 1], sizes = [8, 1], strides = [1, 1]} : vector<8x12xf32> to vector<8x1xf32>
    %62 = vector.broadcast %61 : vector<8x1xf32> to vector<8x128xf32>
    %63 = vector.broadcast %12 : vector<1x128xf32> to vector<8x128xf32>
    %64 = arith.mulf %62, %63 : vector<8x128xf32>
    %65 = arith.addf %60, %64 : vector<8x128xf32>
    %66 = vector.broadcast %17 : vector<1x128xf32> to vector<8x128xf32>
    %67 = arith.addf %65, %66 : vector<8x128xf32>
    %68 = math.tanh %67 : vector<8x128xf32>
    %69 = vector.extract_strided_slice %68 {offsets = [0, 0], sizes = [8, 32], strides = [1, 1]} : vector<8x128xf32> to vector<8x32xf32>
    %cst_26 = arith.constant 5.000000e-01 : f32
    %70 = vector.broadcast %cst_26 : f32 to vector<8x32xf32>
    %71 = arith.mulf %70, %69 : vector<8x32xf32>
    %cst_27 = arith.constant 5.000000e-01 : f32
    %72 = vector.broadcast %cst_27 : f32 to vector<8x32xf32>
    %73 = arith.addf %71, %72 : vector<8x32xf32>
    %74 = vector.extract_strided_slice %68 {offsets = [0, 32], sizes = [8, 32], strides = [1, 1]} : vector<8x128xf32> to vector<8x32xf32>
    %cst_28 = arith.constant 5.000000e-01 : f32
    %75 = vector.broadcast %cst_28 : f32 to vector<8x32xf32>
    %76 = arith.mulf %75, %74 : vector<8x32xf32>
    %cst_29 = arith.constant 5.000000e-01 : f32
    %77 = vector.broadcast %cst_29 : f32 to vector<8x32xf32>
    %78 = arith.addf %76, %77 : vector<8x32xf32>
    %79 = vector.extract_strided_slice %68 {offsets = [0, 64], sizes = [8, 32], strides = [1, 1]} : vector<8x128xf32> to vector<8x32xf32>
    %80 = vector.extract_strided_slice %68 {offsets = [0, 96], sizes = [8, 32], strides = [1, 1]} : vector<8x128xf32> to vector<8x32xf32>
    %cst_30 = arith.constant 5.000000e-01 : f32
    %81 = vector.broadcast %cst_30 : f32 to vector<8x32xf32>
    %82 = arith.mulf %81, %80 : vector<8x32xf32>
    %cst_31 = arith.constant 5.000000e-01 : f32
    %83 = vector.broadcast %cst_31 : f32 to vector<8x32xf32>
    %84 = arith.addf %82, %83 : vector<8x32xf32>
    %85 = arith.mulf %78, %50 : vector<8x32xf32>
    %86 = arith.mulf %73, %79 : vector<8x32xf32>
    %87 = arith.addf %85, %86 : vector<8x32xf32>
    %88 = math.tanh %87 : vector<8x32xf32>
    %89 = arith.mulf %84, %88 : vector<8x32xf32>
    %90 = vector.broadcast %18 : vector<1x32xf32> to vector<8x32xf32>
    %91 = arith.mulf %89, %90 : vector<8x32xf32>
    %cst_32 = arith.constant dense<0.000000e+00> : vector<8xf32>
    %92 = vector.multi_reduction <add>, %91, %cst_32 [1] : vector<8x32xf32> to vector<8xf32>
    %93 = vector.shape_cast %92 : vector<8xf32> to vector<8x1xf32>
    %94 = vector.broadcast %19 : f32 to vector<8x1xf32>
    %95 = arith.addf %93, %94 : vector<8x1xf32>
    %c0_33 = arith.constant 0 : index
    %c1 = arith.constant 1 : index
    %96 = vector.load %arg8[%c0_33, %c1] : memref<8x12xf32, #tpu.memory_space<vmem>>, vector<8x1xf32>
    tpu.vector_store %arg8[%c0_33, %c1], %95 {strides = array<i32>} : memref<8x12xf32, #tpu.memory_space<vmem>>, vector<8x1xf32>,
    %cst_34 = arith.constant dense<0.000000e+00> : vector<8x128xf32>
    %97 = tpu.matmul %89, %15, %cst_34 {dimension_numbers = #tpu.dot_dimension_numbers<[1], [0], [0], [1], [0, 0, 1, 1], [], []>} : vector<8x32xf32>, vector<32x128xf32>, vector<8x128xf32> -> vector<8x128xf32>
    %98 = vector.extract_strided_slice %20 {offsets = [0, 2], sizes = [8, 1], strides = [1, 1]} : vector<8x12xf32> to vector<8x1xf32>
    %99 = vector.broadcast %98 : vector<8x1xf32> to vector<8x128xf32>
    %100 = vector.broadcast %12 : vector<1x128xf32> to vector<8x128xf32>
    %101 = arith.mulf %99, %100 : vector<8x128xf32>
    %102 = arith.addf %97, %101 : vector<8x128xf32>
    %103 = vector.broadcast %17 : vector<1x128xf32> to vector<8x128xf32>
    %104 = arith.addf %102, %103 : vector<8x128xf32>
    %105 = math.tanh %104 : vector<8x128xf32>
    %106 = vector.extract_strided_slice %105 {offsets = [0, 0], sizes = [8, 32], strides = [1, 1]} : vector<8x128xf32> to vector<8x32xf32>
    %cst_35 = arith.constant 5.000000e-01 : f32
    %107 = vector.broadcast %cst_35 : f32 to vector<8x32xf32>
    %108 = arith.mulf %107, %106 : vector<8x32xf32>
    %cst_36 = arith.constant 5.000000e-01 : f32
    %109 = vector.broadcast %cst_36 : f32 to vector<8x32xf32>
    %110 = arith.addf %108, %109 : vector<8x32xf32>
    %111 = vector.extract_strided_slice %105 {offsets = [0, 32], sizes = [8, 32], strides = [1, 1]} : vector<8x128xf32> to vector<8x32xf32>
    %cst_37 = arith.constant 5.000000e-01 : f32
    %112 = vector.broadcast %cst_37 : f32 to vector<8x32xf32>
    %113 = arith.mulf %112, %111 : vector<8x32xf32>
    %cst_38 = arith.constant 5.000000e-01 : f32
    %114 = vector.broadcast %cst_38 : f32 to vector<8x32xf32>
    %115 = arith.addf %113, %114 : vector<8x32xf32>
    %116 = vector.extract_strided_slice %105 {offsets = [0, 64], sizes = [8, 32], strides = [1, 1]} : vector<8x128xf32> to vector<8x32xf32>
    %117 = vector.extract_strided_slice %105 {offsets = [0, 96], sizes = [8, 32], strides = [1, 1]} : vector<8x128xf32> to vector<8x32xf32>
    %cst_39 = arith.constant 5.000000e-01 : f32
    %118 = vector.broadcast %cst_39 : f32 to vector<8x32xf32>
    %119 = arith.mulf %118, %117 : vector<8x32xf32>
    %cst_40 = arith.constant 5.000000e-01 : f32
    %120 = vector.broadcast %cst_40 : f32 to vector<8x32xf32>
    %121 = arith.addf %119, %120 : vector<8x32xf32>
    %122 = arith.mulf %115, %87 : vector<8x32xf32>
    %123 = arith.mulf %110, %116 : vector<8x32xf32>
    %124 = arith.addf %122, %123 : vector<8x32xf32>
    %125 = math.tanh %124 : vector<8x32xf32>
    %126 = arith.mulf %121, %125 : vector<8x32xf32>
    %127 = vector.broadcast %18 : vector<1x32xf32> to vector<8x32xf32>
    %128 = arith.mulf %126, %127 : vector<8x32xf32>
    %cst_41 = arith.constant dense<0.000000e+00> : vector<8xf32>
    %129 = vector.multi_reduction <add>, %128, %cst_41 [1] : vector<8x32xf32> to vector<8xf32>
    %130 = vector.shape_cast %129 : vector<8xf32> to vector<8x1xf32>
    %131 = vector.broadcast %19 : f32 to vector<8x1xf32>
    %132 = arith.addf %130, %131 : vector<8x1xf32>
    %c0_42 = arith.constant 0 : index
    %c2 = arith.constant 2 : index
    %133 = vector.load %arg8[%c0_42, %c2] : memref<8x12xf32, #tpu.memory_space<vmem>>, vector<8x1xf32>
    tpu.vector_store %arg8[%c0_42, %c2], %132 {strides = array<i32>} : memref<8x12xf32, #tpu.memory_space<vmem>>, vector<8x1xf32>,
    %cst_43 = arith.constant dense<0.000000e+00> : vector<8x128xf32>
    %134 = tpu.matmul %126, %15, %cst_43 {dimension_numbers = #tpu.dot_dimension_numbers<[1], [0], [0], [1], [0, 0, 1, 1], [], []>} : vector<8x32xf32>, vector<32x128xf32>, vector<8x128xf32> -> vector<8x128xf32>
    %135 = vector.extract_strided_slice %20 {offsets = [0, 3], sizes = [8, 1], strides = [1, 1]} : vector<8x12xf32> to vector<8x1xf32>
    %136 = vector.broadcast %135 : vector<8x1xf32> to vector<8x128xf32>
    %137 = vector.broadcast %12 : vector<1x128xf32> to vector<8x128xf32>
    %138 = arith.mulf %136, %137 : vector<8x128xf32>
    %139 = arith.addf %134, %138 : vector<8x128xf32>
    %140 = vector.broadcast %17 : vector<1x128xf32> to vector<8x128xf32>
    %141 = arith.addf %139, %140 : vector<8x128xf32>
    %142 = math.tanh %141 : vector<8x128xf32>
    %143 = vector.extract_strided_slice %142 {offsets = [0, 0], sizes = [8, 32], strides = [1, 1]} : vector<8x128xf32> to vector<8x32xf32>
    %cst_44 = arith.constant 5.000000e-01 : f32
    %144 = vector.broadcast %cst_44 : f32 to vector<8x32xf32>
    %145 = arith.mulf %144, %143 : vector<8x32xf32>
    %cst_45 = arith.constant 5.000000e-01 : f32
    %146 = vector.broadcast %cst_45 : f32 to vector<8x32xf32>
    %147 = arith.addf %145, %146 : vector<8x32xf32>
    %148 = vector.extract_strided_slice %142 {offsets = [0, 32], sizes = [8, 32], strides = [1, 1]} : vector<8x128xf32> to vector<8x32xf32>
    %cst_46 = arith.constant 5.000000e-01 : f32
    %149 = vector.broadcast %cst_46 : f32 to vector<8x32xf32>
    %150 = arith.mulf %149, %148 : vector<8x32xf32>
    %cst_47 = arith.constant 5.000000e-01 : f32
    %151 = vector.broadcast %cst_47 : f32 to vector<8x32xf32>
    %152 = arith.addf %150, %151 : vector<8x32xf32>
    %153 = vector.extract_strided_slice %142 {offsets = [0, 64], sizes = [8, 32], strides = [1, 1]} : vector<8x128xf32> to vector<8x32xf32>
    %154 = vector.extract_strided_slice %142 {offsets = [0, 96], sizes = [8, 32], strides = [1, 1]} : vector<8x128xf32> to vector<8x32xf32>
    %cst_48 = arith.constant 5.000000e-01 : f32
    %155 = vector.broadcast %cst_48 : f32 to vector<8x32xf32>
    %156 = arith.mulf %155, %154 : vector<8x32xf32>
    %cst_49 = arith.constant 5.000000e-01 : f32
    %157 = vector.broadcast %cst_49 : f32 to vector<8x32xf32>
    %158 = arith.addf %156, %157 : vector<8x32xf32>
    %159 = arith.mulf %152, %124 : vector<8x32xf32>
    %160 = arith.mulf %147, %153 : vector<8x32xf32>
    %161 = arith.addf %159, %160 : vector<8x32xf32>
    %162 = math.tanh %161 : vector<8x32xf32>
    %163 = arith.mulf %158, %162 : vector<8x32xf32>
    %164 = vector.broadcast %18 : vector<1x32xf32> to vector<8x32xf32>
    %165 = arith.mulf %163, %164 : vector<8x32xf32>
    %cst_50 = arith.constant dense<0.000000e+00> : vector<8xf32>
    %166 = vector.multi_reduction <add>, %165, %cst_50 [1] : vector<8x32xf32> to vector<8xf32>
    %167 = vector.shape_cast %166 : vector<8xf32> to vector<8x1xf32>
    %168 = vector.broadcast %19 : f32 to vector<8x1xf32>
    %169 = arith.addf %167, %168 : vector<8x1xf32>
    %c0_51 = arith.constant 0 : index
    %c3 = arith.constant 3 : index
    %170 = vector.load %arg8[%c0_51, %c3] : memref<8x12xf32, #tpu.memory_space<vmem>>, vector<8x1xf32>
    tpu.vector_store %arg8[%c0_51, %c3], %169 {strides = array<i32>} : memref<8x12xf32, #tpu.memory_space<vmem>>, vector<8x1xf32>,
    %cst_52 = arith.constant dense<0.000000e+00> : vector<8x128xf32>
    %171 = tpu.matmul %163, %15, %cst_52 {dimension_numbers = #tpu.dot_dimension_numbers<[1], [0], [0], [1], [0, 0, 1, 1], [], []>} : vector<8x32xf32>, vector<32x128xf32>, vector<8x128xf32> -> vector<8x128xf32>
    %172 = vector.extract_strided_slice %20 {offsets = [0, 4], sizes = [8, 1], strides = [1, 1]} : vector<8x12xf32> to vector<8x1xf32>
    %173 = vector.broadcast %172 : vector<8x1xf32> to vector<8x128xf32>
    %174 = vector.broadcast %12 : vector<1x128xf32> to vector<8x128xf32>
    %175 = arith.mulf %173, %174 : vector<8x128xf32>
    %176 = arith.addf %171, %175 : vector<8x128xf32>
    %177 = vector.broadcast %17 : vector<1x128xf32> to vector<8x128xf32>
    %178 = arith.addf %176, %177 : vector<8x128xf32>
    %179 = math.tanh %178 : vector<8x128xf32>
    %180 = vector.extract_strided_slice %179 {offsets = [0, 0], sizes = [8, 32], strides = [1, 1]} : vector<8x128xf32> to vector<8x32xf32>
    %cst_53 = arith.constant 5.000000e-01 : f32
    %181 = vector.broadcast %cst_53 : f32 to vector<8x32xf32>
    %182 = arith.mulf %181, %180 : vector<8x32xf32>
    %cst_54 = arith.constant 5.000000e-01 : f32
    %183 = vector.broadcast %cst_54 : f32 to vector<8x32xf32>
    %184 = arith.addf %182, %183 : vector<8x32xf32>
    %185 = vector.extract_strided_slice %179 {offsets = [0, 32], sizes = [8, 32], strides = [1, 1]} : vector<8x128xf32> to vector<8x32xf32>
    %cst_55 = arith.constant 5.000000e-01 : f32
    %186 = vector.broadcast %cst_55 : f32 to vector<8x32xf32>
    %187 = arith.mulf %186, %185 : vector<8x32xf32>
    %cst_56 = arith.constant 5.000000e-01 : f32
    %188 = vector.broadcast %cst_56 : f32 to vector<8x32xf32>
    %189 = arith.addf %187, %188 : vector<8x32xf32>
    %190 = vector.extract_strided_slice %179 {offsets = [0, 64], sizes = [8, 32], strides = [1, 1]} : vector<8x128xf32> to vector<8x32xf32>
    %191 = vector.extract_strided_slice %179 {offsets = [0, 96], sizes = [8, 32], strides = [1, 1]} : vector<8x128xf32> to vector<8x32xf32>
    %cst_57 = arith.constant 5.000000e-01 : f32
    %192 = vector.broadcast %cst_57 : f32 to vector<8x32xf32>
    %193 = arith.mulf %192, %191 : vector<8x32xf32>
    %cst_58 = arith.constant 5.000000e-01 : f32
    %194 = vector.broadcast %cst_58 : f32 to vector<8x32xf32>
    %195 = arith.addf %193, %194 : vector<8x32xf32>
    %196 = arith.mulf %189, %161 : vector<8x32xf32>
    %197 = arith.mulf %184, %190 : vector<8x32xf32>
    %198 = arith.addf %196, %197 : vector<8x32xf32>
    %199 = math.tanh %198 : vector<8x32xf32>
    %200 = arith.mulf %195, %199 : vector<8x32xf32>
    %201 = vector.broadcast %18 : vector<1x32xf32> to vector<8x32xf32>
    %202 = arith.mulf %200, %201 : vector<8x32xf32>
    %cst_59 = arith.constant dense<0.000000e+00> : vector<8xf32>
    %203 = vector.multi_reduction <add>, %202, %cst_59 [1] : vector<8x32xf32> to vector<8xf32>
    %204 = vector.shape_cast %203 : vector<8xf32> to vector<8x1xf32>
    %205 = vector.broadcast %19 : f32 to vector<8x1xf32>
    %206 = arith.addf %204, %205 : vector<8x1xf32>
    %c0_60 = arith.constant 0 : index
    %c4 = arith.constant 4 : index
    %207 = vector.load %arg8[%c0_60, %c4] : memref<8x12xf32, #tpu.memory_space<vmem>>, vector<8x1xf32>
    tpu.vector_store %arg8[%c0_60, %c4], %206 {strides = array<i32>} : memref<8x12xf32, #tpu.memory_space<vmem>>, vector<8x1xf32>,
    %cst_61 = arith.constant dense<0.000000e+00> : vector<8x128xf32>
    %208 = tpu.matmul %200, %15, %cst_61 {dimension_numbers = #tpu.dot_dimension_numbers<[1], [0], [0], [1], [0, 0, 1, 1], [], []>} : vector<8x32xf32>, vector<32x128xf32>, vector<8x128xf32> -> vector<8x128xf32>
    %209 = vector.extract_strided_slice %20 {offsets = [0, 5], sizes = [8, 1], strides = [1, 1]} : vector<8x12xf32> to vector<8x1xf32>
    %210 = vector.broadcast %209 : vector<8x1xf32> to vector<8x128xf32>
    %211 = vector.broadcast %12 : vector<1x128xf32> to vector<8x128xf32>
    %212 = arith.mulf %210, %211 : vector<8x128xf32>
    %213 = arith.addf %208, %212 : vector<8x128xf32>
    %214 = vector.broadcast %17 : vector<1x128xf32> to vector<8x128xf32>
    %215 = arith.addf %213, %214 : vector<8x128xf32>
    %216 = math.tanh %215 : vector<8x128xf32>
    %217 = vector.extract_strided_slice %216 {offsets = [0, 0], sizes = [8, 32], strides = [1, 1]} : vector<8x128xf32> to vector<8x32xf32>
    %cst_62 = arith.constant 5.000000e-01 : f32
    %218 = vector.broadcast %cst_62 : f32 to vector<8x32xf32>
    %219 = arith.mulf %218, %217 : vector<8x32xf32>
    %cst_63 = arith.constant 5.000000e-01 : f32
    %220 = vector.broadcast %cst_63 : f32 to vector<8x32xf32>
    %221 = arith.addf %219, %220 : vector<8x32xf32>
    %222 = vector.extract_strided_slice %216 {offsets = [0, 32], sizes = [8, 32], strides = [1, 1]} : vector<8x128xf32> to vector<8x32xf32>
    %cst_64 = arith.constant 5.000000e-01 : f32
    %223 = vector.broadcast %cst_64 : f32 to vector<8x32xf32>
    %224 = arith.mulf %223, %222 : vector<8x32xf32>
    %cst_65 = arith.constant 5.000000e-01 : f32
    %225 = vector.broadcast %cst_65 : f32 to vector<8x32xf32>
    %226 = arith.addf %224, %225 : vector<8x32xf32>
    %227 = vector.extract_strided_slice %216 {offsets = [0, 64], sizes = [8, 32], strides = [1, 1]} : vector<8x128xf32> to vector<8x32xf32>
    %228 = vector.extract_strided_slice %216 {offsets = [0, 96], sizes = [8, 32], strides = [1, 1]} : vector<8x128xf32> to vector<8x32xf32>
    %cst_66 = arith.constant 5.000000e-01 : f32
    %229 = vector.broadcast %cst_66 : f32 to vector<8x32xf32>
    %230 = arith.mulf %229, %228 : vector<8x32xf32>
    %cst_67 = arith.constant 5.000000e-01 : f32
    %231 = vector.broadcast %cst_67 : f32 to vector<8x32xf32>
    %232 = arith.addf %230, %231 : vector<8x32xf32>
    %233 = arith.mulf %226, %198 : vector<8x32xf32>
    %234 = arith.mulf %221, %227 : vector<8x32xf32>
    %235 = arith.addf %233, %234 : vector<8x32xf32>
    %236 = math.tanh %235 : vector<8x32xf32>
    %237 = arith.mulf %232, %236 : vector<8x32xf32>
    %238 = vector.broadcast %18 : vector<1x32xf32> to vector<8x32xf32>
    %239 = arith.mulf %237, %238 : vector<8x32xf32>
    %cst_68 = arith.constant dense<0.000000e+00> : vector<8xf32>
    %240 = vector.multi_reduction <add>, %239, %cst_68 [1] : vector<8x32xf32> to vector<8xf32>
    %241 = vector.shape_cast %240 : vector<8xf32> to vector<8x1xf32>
    %242 = vector.broadcast %19 : f32 to vector<8x1xf32>
    %243 = arith.addf %241, %242 : vector<8x1xf32>
    %c0_69 = arith.constant 0 : index
    %c5 = arith.constant 5 : index
    %244 = vector.load %arg8[%c0_69, %c5] : memref<8x12xf32, #tpu.memory_space<vmem>>, vector<8x1xf32>
    tpu.vector_store %arg8[%c0_69, %c5], %243 {strides = array<i32>} : memref<8x12xf32, #tpu.memory_space<vmem>>, vector<8x1xf32>,
    %cst_70 = arith.constant dense<0.000000e+00> : vector<8x128xf32>
    %245 = tpu.matmul %237, %15, %cst_70 {dimension_numbers = #tpu.dot_dimension_numbers<[1], [0], [0], [1], [0, 0, 1, 1], [], []>} : vector<8x32xf32>, vector<32x128xf32>, vector<8x128xf32> -> vector<8x128xf32>
    %246 = vector.extract_strided_slice %20 {offsets = [0, 6], sizes = [8, 1], strides = [1, 1]} : vector<8x12xf32> to vector<8x1xf32>
    %247 = vector.broadcast %246 : vector<8x1xf32> to vector<8x128xf32>
    %248 = vector.broadcast %12 : vector<1x128xf32> to vector<8x128xf32>
    %249 = arith.mulf %247, %248 : vector<8x128xf32>
    %250 = arith.addf %245, %249 : vector<8x128xf32>
    %251 = vector.broadcast %17 : vector<1x128xf32> to vector<8x128xf32>
    %252 = arith.addf %250, %251 : vector<8x128xf32>
    %253 = math.tanh %252 : vector<8x128xf32>
    %254 = vector.extract_strided_slice %253 {offsets = [0, 0], sizes = [8, 32], strides = [1, 1]} : vector<8x128xf32> to vector<8x32xf32>
    %cst_71 = arith.constant 5.000000e-01 : f32
    %255 = vector.broadcast %cst_71 : f32 to vector<8x32xf32>
    %256 = arith.mulf %255, %254 : vector<8x32xf32>
    %cst_72 = arith.constant 5.000000e-01 : f32
    %257 = vector.broadcast %cst_72 : f32 to vector<8x32xf32>
    %258 = arith.addf %256, %257 : vector<8x32xf32>
    %259 = vector.extract_strided_slice %253 {offsets = [0, 32], sizes = [8, 32], strides = [1, 1]} : vector<8x128xf32> to vector<8x32xf32>
    %cst_73 = arith.constant 5.000000e-01 : f32
    %260 = vector.broadcast %cst_73 : f32 to vector<8x32xf32>
    %261 = arith.mulf %260, %259 : vector<8x32xf32>
    %cst_74 = arith.constant 5.000000e-01 : f32
    %262 = vector.broadcast %cst_74 : f32 to vector<8x32xf32>
    %263 = arith.addf %261, %262 : vector<8x32xf32>
    %264 = vector.extract_strided_slice %253 {offsets = [0, 64], sizes = [8, 32], strides = [1, 1]} : vector<8x128xf32> to vector<8x32xf32>
    %265 = vector.extract_strided_slice %253 {offsets = [0, 96], sizes = [8, 32], strides = [1, 1]} : vector<8x128xf32> to vector<8x32xf32>
    %cst_75 = arith.constant 5.000000e-01 : f32
    %266 = vector.broadcast %cst_75 : f32 to vector<8x32xf32>
    %267 = arith.mulf %266, %265 : vector<8x32xf32>
    %cst_76 = arith.constant 5.000000e-01 : f32
    %268 = vector.broadcast %cst_76 : f32 to vector<8x32xf32>
    %269 = arith.addf %267, %268 : vector<8x32xf32>
    %270 = arith.mulf %263, %235 : vector<8x32xf32>
    %271 = arith.mulf %258, %264 : vector<8x32xf32>
    %272 = arith.addf %270, %271 : vector<8x32xf32>
    %273 = math.tanh %272 : vector<8x32xf32>
    %274 = arith.mulf %269, %273 : vector<8x32xf32>
    %275 = vector.broadcast %18 : vector<1x32xf32> to vector<8x32xf32>
    %276 = arith.mulf %274, %275 : vector<8x32xf32>
    %cst_77 = arith.constant dense<0.000000e+00> : vector<8xf32>
    %277 = vector.multi_reduction <add>, %276, %cst_77 [1] : vector<8x32xf32> to vector<8xf32>
    %278 = vector.shape_cast %277 : vector<8xf32> to vector<8x1xf32>
    %279 = vector.broadcast %19 : f32 to vector<8x1xf32>
    %280 = arith.addf %278, %279 : vector<8x1xf32>
    %c0_78 = arith.constant 0 : index
    %c6 = arith.constant 6 : index
    %281 = vector.load %arg8[%c0_78, %c6] : memref<8x12xf32, #tpu.memory_space<vmem>>, vector<8x1xf32>
    tpu.vector_store %arg8[%c0_78, %c6], %280 {strides = array<i32>} : memref<8x12xf32, #tpu.memory_space<vmem>>, vector<8x1xf32>,
    %cst_79 = arith.constant dense<0.000000e+00> : vector<8x128xf32>
    %282 = tpu.matmul %274, %15, %cst_79 {dimension_numbers = #tpu.dot_dimension_numbers<[1], [0], [0], [1], [0, 0, 1, 1], [], []>} : vector<8x32xf32>, vector<32x128xf32>, vector<8x128xf32> -> vector<8x128xf32>
    %283 = vector.extract_strided_slice %20 {offsets = [0, 7], sizes = [8, 1], strides = [1, 1]} : vector<8x12xf32> to vector<8x1xf32>
    %284 = vector.broadcast %283 : vector<8x1xf32> to vector<8x128xf32>
    %285 = vector.broadcast %12 : vector<1x128xf32> to vector<8x128xf32>
    %286 = arith.mulf %284, %285 : vector<8x128xf32>
    %287 = arith.addf %282, %286 : vector<8x128xf32>
    %288 = vector.broadcast %17 : vector<1x128xf32> to vector<8x128xf32>
    %289 = arith.addf %287, %288 : vector<8x128xf32>
    %290 = math.tanh %289 : vector<8x128xf32>
    %291 = vector.extract_strided_slice %290 {offsets = [0, 0], sizes = [8, 32], strides = [1, 1]} : vector<8x128xf32> to vector<8x32xf32>
    %cst_80 = arith.constant 5.000000e-01 : f32
    %292 = vector.broadcast %cst_80 : f32 to vector<8x32xf32>
    %293 = arith.mulf %292, %291 : vector<8x32xf32>
    %cst_81 = arith.constant 5.000000e-01 : f32
    %294 = vector.broadcast %cst_81 : f32 to vector<8x32xf32>
    %295 = arith.addf %293, %294 : vector<8x32xf32>
    %296 = vector.extract_strided_slice %290 {offsets = [0, 32], sizes = [8, 32], strides = [1, 1]} : vector<8x128xf32> to vector<8x32xf32>
    %cst_82 = arith.constant 5.000000e-01 : f32
    %297 = vector.broadcast %cst_82 : f32 to vector<8x32xf32>
    %298 = arith.mulf %297, %296 : vector<8x32xf32>
    %cst_83 = arith.constant 5.000000e-01 : f32
    %299 = vector.broadcast %cst_83 : f32 to vector<8x32xf32>
    %300 = arith.addf %298, %299 : vector<8x32xf32>
    %301 = vector.extract_strided_slice %290 {offsets = [0, 64], sizes = [8, 32], strides = [1, 1]} : vector<8x128xf32> to vector<8x32xf32>
    %302 = vector.extract_strided_slice %290 {offsets = [0, 96], sizes = [8, 32], strides = [1, 1]} : vector<8x128xf32> to vector<8x32xf32>
    %cst_84 = arith.constant 5.000000e-01 : f32
    %303 = vector.broadcast %cst_84 : f32 to vector<8x32xf32>
    %304 = arith.mulf %303, %302 : vector<8x32xf32>
    %cst_85 = arith.constant 5.000000e-01 : f32
    %305 = vector.broadcast %cst_85 : f32 to vector<8x32xf32>
    %306 = arith.addf %304, %305 : vector<8x32xf32>
    %307 = arith.mulf %300, %272 : vector<8x32xf32>
    %308 = arith.mulf %295, %301 : vector<8x32xf32>
    %309 = arith.addf %307, %308 : vector<8x32xf32>
    %310 = math.tanh %309 : vector<8x32xf32>
    %311 = arith.mulf %306, %310 : vector<8x32xf32>
    %312 = vector.broadcast %18 : vector<1x32xf32> to vector<8x32xf32>
    %313 = arith.mulf %311, %312 : vector<8x32xf32>
    %cst_86 = arith.constant dense<0.000000e+00> : vector<8xf32>
    %314 = vector.multi_reduction <add>, %313, %cst_86 [1] : vector<8x32xf32> to vector<8xf32>
    %315 = vector.shape_cast %314 : vector<8xf32> to vector<8x1xf32>
    %316 = vector.broadcast %19 : f32 to vector<8x1xf32>
    %317 = arith.addf %315, %316 : vector<8x1xf32>
    %c0_87 = arith.constant 0 : index
    %c7 = arith.constant 7 : index
    %318 = vector.load %arg8[%c0_87, %c7] : memref<8x12xf32, #tpu.memory_space<vmem>>, vector<8x1xf32>
    tpu.vector_store %arg8[%c0_87, %c7], %317 {strides = array<i32>} : memref<8x12xf32, #tpu.memory_space<vmem>>, vector<8x1xf32>,
    %cst_88 = arith.constant dense<0.000000e+00> : vector<8x128xf32>
    %319 = tpu.matmul %311, %15, %cst_88 {dimension_numbers = #tpu.dot_dimension_numbers<[1], [0], [0], [1], [0, 0, 1, 1], [], []>} : vector<8x32xf32>, vector<32x128xf32>, vector<8x128xf32> -> vector<8x128xf32>
    %320 = vector.extract_strided_slice %20 {offsets = [0, 8], sizes = [8, 1], strides = [1, 1]} : vector<8x12xf32> to vector<8x1xf32>
    %321 = vector.broadcast %320 : vector<8x1xf32> to vector<8x128xf32>
    %322 = vector.broadcast %12 : vector<1x128xf32> to vector<8x128xf32>
    %323 = arith.mulf %321, %322 : vector<8x128xf32>
    %324 = arith.addf %319, %323 : vector<8x128xf32>
    %325 = vector.broadcast %17 : vector<1x128xf32> to vector<8x128xf32>
    %326 = arith.addf %324, %325 : vector<8x128xf32>
    %327 = math.tanh %326 : vector<8x128xf32>
    %328 = vector.extract_strided_slice %327 {offsets = [0, 0], sizes = [8, 32], strides = [1, 1]} : vector<8x128xf32> to vector<8x32xf32>
    %cst_89 = arith.constant 5.000000e-01 : f32
    %329 = vector.broadcast %cst_89 : f32 to vector<8x32xf32>
    %330 = arith.mulf %329, %328 : vector<8x32xf32>
    %cst_90 = arith.constant 5.000000e-01 : f32
    %331 = vector.broadcast %cst_90 : f32 to vector<8x32xf32>
    %332 = arith.addf %330, %331 : vector<8x32xf32>
    %333 = vector.extract_strided_slice %327 {offsets = [0, 32], sizes = [8, 32], strides = [1, 1]} : vector<8x128xf32> to vector<8x32xf32>
    %cst_91 = arith.constant 5.000000e-01 : f32
    %334 = vector.broadcast %cst_91 : f32 to vector<8x32xf32>
    %335 = arith.mulf %334, %333 : vector<8x32xf32>
    %cst_92 = arith.constant 5.000000e-01 : f32
    %336 = vector.broadcast %cst_92 : f32 to vector<8x32xf32>
    %337 = arith.addf %335, %336 : vector<8x32xf32>
    %338 = vector.extract_strided_slice %327 {offsets = [0, 64], sizes = [8, 32], strides = [1, 1]} : vector<8x128xf32> to vector<8x32xf32>
    %339 = vector.extract_strided_slice %327 {offsets = [0, 96], sizes = [8, 32], strides = [1, 1]} : vector<8x128xf32> to vector<8x32xf32>
    %cst_93 = arith.constant 5.000000e-01 : f32
    %340 = vector.broadcast %cst_93 : f32 to vector<8x32xf32>
    %341 = arith.mulf %340, %339 : vector<8x32xf32>
    %cst_94 = arith.constant 5.000000e-01 : f32
    %342 = vector.broadcast %cst_94 : f32 to vector<8x32xf32>
    %343 = arith.addf %341, %342 : vector<8x32xf32>
    %344 = arith.mulf %337, %309 : vector<8x32xf32>
    %345 = arith.mulf %332, %338 : vector<8x32xf32>
    %346 = arith.addf %344, %345 : vector<8x32xf32>
    %347 = math.tanh %346 : vector<8x32xf32>
    %348 = arith.mulf %343, %347 : vector<8x32xf32>
    %349 = vector.broadcast %18 : vector<1x32xf32> to vector<8x32xf32>
    %350 = arith.mulf %348, %349 : vector<8x32xf32>
    %cst_95 = arith.constant dense<0.000000e+00> : vector<8xf32>
    %351 = vector.multi_reduction <add>, %350, %cst_95 [1] : vector<8x32xf32> to vector<8xf32>
    %352 = vector.shape_cast %351 : vector<8xf32> to vector<8x1xf32>
    %353 = vector.broadcast %19 : f32 to vector<8x1xf32>
    %354 = arith.addf %352, %353 : vector<8x1xf32>
    %c0_96 = arith.constant 0 : index
    %c8 = arith.constant 8 : index
    %355 = vector.load %arg8[%c0_96, %c8] : memref<8x12xf32, #tpu.memory_space<vmem>>, vector<8x1xf32>
    tpu.vector_store %arg8[%c0_96, %c8], %354 {strides = array<i32>} : memref<8x12xf32, #tpu.memory_space<vmem>>, vector<8x1xf32>,
    %cst_97 = arith.constant dense<0.000000e+00> : vector<8x128xf32>
    %356 = tpu.matmul %348, %15, %cst_97 {dimension_numbers = #tpu.dot_dimension_numbers<[1], [0], [0], [1], [0, 0, 1, 1], [], []>} : vector<8x32xf32>, vector<32x128xf32>, vector<8x128xf32> -> vector<8x128xf32>
    %357 = vector.extract_strided_slice %20 {offsets = [0, 9], sizes = [8, 1], strides = [1, 1]} : vector<8x12xf32> to vector<8x1xf32>
    %358 = vector.broadcast %357 : vector<8x1xf32> to vector<8x128xf32>
    %359 = vector.broadcast %12 : vector<1x128xf32> to vector<8x128xf32>
    %360 = arith.mulf %358, %359 : vector<8x128xf32>
    %361 = arith.addf %356, %360 : vector<8x128xf32>
    %362 = vector.broadcast %17 : vector<1x128xf32> to vector<8x128xf32>
    %363 = arith.addf %361, %362 : vector<8x128xf32>
    %364 = math.tanh %363 : vector<8x128xf32>
    %365 = vector.extract_strided_slice %364 {offsets = [0, 0], sizes = [8, 32], strides = [1, 1]} : vector<8x128xf32> to vector<8x32xf32>
    %cst_98 = arith.constant 5.000000e-01 : f32
    %366 = vector.broadcast %cst_98 : f32 to vector<8x32xf32>
    %367 = arith.mulf %366, %365 : vector<8x32xf32>
    %cst_99 = arith.constant 5.000000e-01 : f32
    %368 = vector.broadcast %cst_99 : f32 to vector<8x32xf32>
    %369 = arith.addf %367, %368 : vector<8x32xf32>
    %370 = vector.extract_strided_slice %364 {offsets = [0, 32], sizes = [8, 32], strides = [1, 1]} : vector<8x128xf32> to vector<8x32xf32>
    %cst_100 = arith.constant 5.000000e-01 : f32
    %371 = vector.broadcast %cst_100 : f32 to vector<8x32xf32>
    %372 = arith.mulf %371, %370 : vector<8x32xf32>
    %cst_101 = arith.constant 5.000000e-01 : f32
    %373 = vector.broadcast %cst_101 : f32 to vector<8x32xf32>
    %374 = arith.addf %372, %373 : vector<8x32xf32>
    %375 = vector.extract_strided_slice %364 {offsets = [0, 64], sizes = [8, 32], strides = [1, 1]} : vector<8x128xf32> to vector<8x32xf32>
    %376 = vector.extract_strided_slice %364 {offsets = [0, 96], sizes = [8, 32], strides = [1, 1]} : vector<8x128xf32> to vector<8x32xf32>
    %cst_102 = arith.constant 5.000000e-01 : f32
    %377 = vector.broadcast %cst_102 : f32 to vector<8x32xf32>
    %378 = arith.mulf %377, %376 : vector<8x32xf32>
    %cst_103 = arith.constant 5.000000e-01 : f32
    %379 = vector.broadcast %cst_103 : f32 to vector<8x32xf32>
    %380 = arith.addf %378, %379 : vector<8x32xf32>
    %381 = arith.mulf %374, %346 : vector<8x32xf32>
    %382 = arith.mulf %369, %375 : vector<8x32xf32>
    %383 = arith.addf %381, %382 : vector<8x32xf32>
    %384 = math.tanh %383 : vector<8x32xf32>
    %385 = arith.mulf %380, %384 : vector<8x32xf32>
    %386 = vector.broadcast %18 : vector<1x32xf32> to vector<8x32xf32>
    %387 = arith.mulf %385, %386 : vector<8x32xf32>
    %cst_104 = arith.constant dense<0.000000e+00> : vector<8xf32>
    %388 = vector.multi_reduction <add>, %387, %cst_104 [1] : vector<8x32xf32> to vector<8xf32>
    %389 = vector.shape_cast %388 : vector<8xf32> to vector<8x1xf32>
    %390 = vector.broadcast %19 : f32 to vector<8x1xf32>
    %391 = arith.addf %389, %390 : vector<8x1xf32>
    %c0_105 = arith.constant 0 : index
    %c9 = arith.constant 9 : index
    %392 = vector.load %arg8[%c0_105, %c9] : memref<8x12xf32, #tpu.memory_space<vmem>>, vector<8x1xf32>
    tpu.vector_store %arg8[%c0_105, %c9], %391 {strides = array<i32>} : memref<8x12xf32, #tpu.memory_space<vmem>>, vector<8x1xf32>,
    %cst_106 = arith.constant dense<0.000000e+00> : vector<8x128xf32>
    %393 = tpu.matmul %385, %15, %cst_106 {dimension_numbers = #tpu.dot_dimension_numbers<[1], [0], [0], [1], [0, 0, 1, 1], [], []>} : vector<8x32xf32>, vector<32x128xf32>, vector<8x128xf32> -> vector<8x128xf32>
    %394 = vector.extract_strided_slice %20 {offsets = [0, 10], sizes = [8, 1], strides = [1, 1]} : vector<8x12xf32> to vector<8x1xf32>
    %395 = vector.broadcast %394 : vector<8x1xf32> to vector<8x128xf32>
    %396 = vector.broadcast %12 : vector<1x128xf32> to vector<8x128xf32>
    %397 = arith.mulf %395, %396 : vector<8x128xf32>
    %398 = arith.addf %393, %397 : vector<8x128xf32>
    %399 = vector.broadcast %17 : vector<1x128xf32> to vector<8x128xf32>
    %400 = arith.addf %398, %399 : vector<8x128xf32>
    %401 = math.tanh %400 : vector<8x128xf32>
    %402 = vector.extract_strided_slice %401 {offsets = [0, 0], sizes = [8, 32], strides = [1, 1]} : vector<8x128xf32> to vector<8x32xf32>
    %cst_107 = arith.constant 5.000000e-01 : f32
    %403 = vector.broadcast %cst_107 : f32 to vector<8x32xf32>
    %404 = arith.mulf %403, %402 : vector<8x32xf32>
    %cst_108 = arith.constant 5.000000e-01 : f32
    %405 = vector.broadcast %cst_108 : f32 to vector<8x32xf32>
    %406 = arith.addf %404, %405 : vector<8x32xf32>
    %407 = vector.extract_strided_slice %401 {offsets = [0, 32], sizes = [8, 32], strides = [1, 1]} : vector<8x128xf32> to vector<8x32xf32>
    %cst_109 = arith.constant 5.000000e-01 : f32
    %408 = vector.broadcast %cst_109 : f32 to vector<8x32xf32>
    %409 = arith.mulf %408, %407 : vector<8x32xf32>
    %cst_110 = arith.constant 5.000000e-01 : f32
    %410 = vector.broadcast %cst_110 : f32 to vector<8x32xf32>
    %411 = arith.addf %409, %410 : vector<8x32xf32>
    %412 = vector.extract_strided_slice %401 {offsets = [0, 64], sizes = [8, 32], strides = [1, 1]} : vector<8x128xf32> to vector<8x32xf32>
    %413 = vector.extract_strided_slice %401 {offsets = [0, 96], sizes = [8, 32], strides = [1, 1]} : vector<8x128xf32> to vector<8x32xf32>
    %cst_111 = arith.constant 5.000000e-01 : f32
    %414 = vector.broadcast %cst_111 : f32 to vector<8x32xf32>
    %415 = arith.mulf %414, %413 : vector<8x32xf32>
    %cst_112 = arith.constant 5.000000e-01 : f32
    %416 = vector.broadcast %cst_112 : f32 to vector<8x32xf32>
    %417 = arith.addf %415, %416 : vector<8x32xf32>
    %418 = arith.mulf %411, %383 : vector<8x32xf32>
    %419 = arith.mulf %406, %412 : vector<8x32xf32>
    %420 = arith.addf %418, %419 : vector<8x32xf32>
    %421 = math.tanh %420 : vector<8x32xf32>
    %422 = arith.mulf %417, %421 : vector<8x32xf32>
    %423 = vector.broadcast %18 : vector<1x32xf32> to vector<8x32xf32>
    %424 = arith.mulf %422, %423 : vector<8x32xf32>
    %cst_113 = arith.constant dense<0.000000e+00> : vector<8xf32>
    %425 = vector.multi_reduction <add>, %424, %cst_113 [1] : vector<8x32xf32> to vector<8xf32>
    %426 = vector.shape_cast %425 : vector<8xf32> to vector<8x1xf32>
    %427 = vector.broadcast %19 : f32 to vector<8x1xf32>
    %428 = arith.addf %426, %427 : vector<8x1xf32>
    %c0_114 = arith.constant 0 : index
    %c10 = arith.constant 10 : index
    %429 = vector.load %arg8[%c0_114, %c10] : memref<8x12xf32, #tpu.memory_space<vmem>>, vector<8x1xf32>
    tpu.vector_store %arg8[%c0_114, %c10], %428 {strides = array<i32>} : memref<8x12xf32, #tpu.memory_space<vmem>>, vector<8x1xf32>,
    %cst_115 = arith.constant dense<0.000000e+00> : vector<8x128xf32>
    %430 = tpu.matmul %422, %15, %cst_115 {dimension_numbers = #tpu.dot_dimension_numbers<[1], [0], [0], [1], [0, 0, 1, 1], [], []>} : vector<8x32xf32>, vector<32x128xf32>, vector<8x128xf32> -> vector<8x128xf32>
    %431 = vector.extract_strided_slice %20 {offsets = [0, 11], sizes = [8, 1], strides = [1, 1]} : vector<8x12xf32> to vector<8x1xf32>
    %432 = vector.broadcast %431 : vector<8x1xf32> to vector<8x128xf32>
    %433 = vector.broadcast %12 : vector<1x128xf32> to vector<8x128xf32>
    %434 = arith.mulf %432, %433 : vector<8x128xf32>
    %435 = arith.addf %430, %434 : vector<8x128xf32>
    %436 = vector.broadcast %17 : vector<1x128xf32> to vector<8x128xf32>
    %437 = arith.addf %435, %436 : vector<8x128xf32>
    %438 = math.tanh %437 : vector<8x128xf32>
    %439 = vector.extract_strided_slice %438 {offsets = [0, 0], sizes = [8, 32], strides = [1, 1]} : vector<8x128xf32> to vector<8x32xf32>
    %cst_116 = arith.constant 5.000000e-01 : f32
    %440 = vector.broadcast %cst_116 : f32 to vector<8x32xf32>
    %441 = arith.mulf %440, %439 : vector<8x32xf32>
    %cst_117 = arith.constant 5.000000e-01 : f32
    %442 = vector.broadcast %cst_117 : f32 to vector<8x32xf32>
    %443 = arith.addf %441, %442 : vector<8x32xf32>
    %444 = vector.extract_strided_slice %438 {offsets = [0, 32], sizes = [8, 32], strides = [1, 1]} : vector<8x128xf32> to vector<8x32xf32>
    %cst_118 = arith.constant 5.000000e-01 : f32
    %445 = vector.broadcast %cst_118 : f32 to vector<8x32xf32>
    %446 = arith.mulf %445, %444 : vector<8x32xf32>
    %cst_119 = arith.constant 5.000000e-01 : f32
    %447 = vector.broadcast %cst_119 : f32 to vector<8x32xf32>
    %448 = arith.addf %446, %447 : vector<8x32xf32>
    %449 = vector.extract_strided_slice %438 {offsets = [0, 64], sizes = [8, 32], strides = [1, 1]} : vector<8x128xf32> to vector<8x32xf32>
    %450 = vector.extract_strided_slice %438 {offsets = [0, 96], sizes = [8, 32], strides = [1, 1]} : vector<8x128xf32> to vector<8x32xf32>
    %cst_120 = arith.constant 5.000000e-01 : f32
    %451 = vector.broadcast %cst_120 : f32 to vector<8x32xf32>
    %452 = arith.mulf %451, %450 : vector<8x32xf32>
    %cst_121 = arith.constant 5.000000e-01 : f32
    %453 = vector.broadcast %cst_121 : f32 to vector<8x32xf32>
    %454 = arith.addf %452, %453 : vector<8x32xf32>
    %455 = arith.mulf %448, %420 : vector<8x32xf32>
    %456 = arith.mulf %443, %449 : vector<8x32xf32>
    %457 = arith.addf %455, %456 : vector<8x32xf32>
    %458 = math.tanh %457 : vector<8x32xf32>
    %459 = arith.mulf %454, %458 : vector<8x32xf32>
    %460 = vector.broadcast %18 : vector<1x32xf32> to vector<8x32xf32>
    %461 = arith.mulf %459, %460 : vector<8x32xf32>
    %cst_122 = arith.constant dense<0.000000e+00> : vector<8xf32>
    %462 = vector.multi_reduction <add>, %461, %cst_122 [1] : vector<8x32xf32> to vector<8xf32>
    %463 = vector.shape_cast %462 : vector<8xf32> to vector<8x1xf32>
    %464 = vector.broadcast %19 : f32 to vector<8x1xf32>
    %465 = arith.addf %463, %464 : vector<8x1xf32>
    %c0_123 = arith.constant 0 : index
    %c11 = arith.constant 11 : index
    %466 = vector.load %arg8[%c0_123, %c11] : memref<8x12xf32, #tpu.memory_space<vmem>>, vector<8x1xf32>
    tpu.vector_store %arg8[%c0_123, %c11], %465 {strides = array<i32>} : memref<8x12xf32, #tpu.memory_space<vmem>>, vector<8x1xf32>,
    return
  }
  func.func @transform_0(%arg0: i32) -> (i32, i32) {
    %c0_i32 = arith.constant 0 : i32
    %c0_i32_0 = arith.constant 0 : i32
    return %arg0, %c0_i32 : i32, i32
  }
  func.func @transform_1(%arg0: i32) -> (i32, i32) {
    %c0_i32 = arith.constant 0 : i32
    %c0_i32_0 = arith.constant 0 : i32
    %c0_i32_1 = arith.constant 0 : i32
    return %c0_i32, %c0_i32_0 : i32, i32
  }
  func.func @transform_2(%arg0: i32) -> (i32, i32) {
    %c0_i32 = arith.constant 0 : i32
    %c0_i32_0 = arith.constant 0 : i32
    %c0_i32_1 = arith.constant 0 : i32
    return %c0_i32, %c0_i32_0 : i32, i32
  }
  func.func @transform_3(%arg0: i32) -> (i32, i32) {
    %c0_i32 = arith.constant 0 : i32
    %c0_i32_0 = arith.constant 0 : i32
    %c0_i32_1 = arith.constant 0 : i32
    return %c0_i32, %c0_i32_0 : i32, i32
  }
  func.func @transform_4(%arg0: i32) -> (i32, i32) {
    %c0_i32 = arith.constant 0 : i32
    %c0_i32_0 = arith.constant 0 : i32
    %c0_i32_1 = arith.constant 0 : i32
    return %c0_i32, %c0_i32_0 : i32, i32
  }
  func.func @transform_5(%arg0: i32) -> (i32, i32) {
    %c0_i32 = arith.constant 0 : i32
    %c0_i32_0 = arith.constant 0 : i32
    %c0_i32_1 = arith.constant 0 : i32
    return %c0_i32, %c0_i32_0 : i32, i32
  }
  func.func @transform_6(%arg0: i32) -> i32 {
    %c0_i32 = arith.constant 0 : i32
    %c0_i32_0 = arith.constant 0 : i32
    return %c0_i32 : i32
  }
  func.func @transform_7(%arg0: i32) -> (i32, i32) {
    %c0_i32 = arith.constant 0 : i32
    %c0_i32_0 = arith.constant 0 : i32
    return %arg0, %c0_i32 : i32, i32
  }
}

</mosaic_0001>

<bundles_post_ra>
// kernel: tpu_custom_call.1
= control target key start
LH: loop header
LB: loop body
LE: loop exit
PB: predicated region body
PF: predicated region fallthrough
CT: control target
= control target key end

     0   :  { %13 = vsyncpa [#allocation4], 0  ;;  %s2234_s0 = inlined_call_operand.hbm [shape: f32[8,12], index: 0, kind: input, shape index: {}]   ;;  %s2235_s1 = inlined_call_operand.vmem [shape: f32[1,128], index: 1, kind: input, shape index: {}]   ;;  %s2236_s2 = inlined_call_operand.hbm [shape: f32[32,128], index: 2, kind: input, shape index: {}]   ;;  %s2237_s3 = inlined_call_operand.vmem [shape: f32[1,128], index: 3, kind: input, shape index: {}]   ;;  %s2238_s4 = inlined_call_operand.vmem [shape: f32[1,128], index: 4, kind: input, shape index: {}]   ;;  %s2239_s5 = inlined_call_operand.vmem [shape: f32[1,32], index: 5, kind: input, shape index: {}]   ;;  %s2240_s6 = inlined_call_operand.<no memory space> [shape: f32[1], index: 6, kind: input, shape index: {}]   ;;  %s2241_s7 = inlined_call_operand.hbm [shape: f32[8,12], index: 7, kind: output, shape index: {}]  }
   0x1   :  { %14 = vsyncpa [#allocation7], 0 }
   0x2   :  { %15 = vsyncpa [#allocation5], 0  ;;  %s1818_s24 = smov [#allocation3]   ;;  %s1819_s26 = smov [#allocation6]  }
   0x3   :  { %s22_s25 = sshll.u32 %s1818_s24, 4  ;;  %s33_s27 = sshll.u32 %s1819_s26, 4  ;;  %s23_s25 = int_to_ptr.vmem [resolvable:$true] %s22_s25  ;;  %s34_s27 = int_to_ptr.vmem [resolvable:$true] %s33_s27 }
   0x4   :  { %s1760_s28 = scalar_lea.vmem %s23_s25, 128  ;;  %p1765_p1 = scmp.lt.s32.totalorder %s23_s25, %s23_s25 }
   0x5   :  { %p1761_p0 = scmp.ne.s32.totalorder %s23_s25, %s1760_s28  ;;  %p1766_p2 = scmp.lt.s32.totalorder %s1760_s28, %s1760_s28 }
   0x7   :  { %p1767_p3 = por %p1766_p2, %p1765_p1 }
   0x9   :  { %p1768_p4 = pnand %p1767_p3, %p1761_p0 }
   0xb   :  { %1771 = shalt.err (!%p1768_p4)
}
   0xc   :  { %25 = dma.hbm_to_vmem [thread:$0]  %s2234_s0, 128, %s23_s25, [#allocation4]  }
   0xd   :  { %s1780_s8 = scalar_lea.vmem %s34_s27, 512  ;;  %p1785_p6 = scmp.lt.s32.totalorder %s34_s27, %s34_s27 }
   0xe   :  { %p1781_p5 = scmp.ne.s32.totalorder %s34_s27, %s1780_s8  ;;  %p1786_p7 = scmp.lt.s32.totalorder %s1780_s8, %s1780_s8 }
  0x10   :  { %p1787_p8 = por %p1786_p7, %p1785_p6 }
  0x12   :  { %p1788_p9 = pnand %p1787_p8, %p1781_p5 }
  0x14   :  { %1791 = shalt.err (!%p1788_p9)
}
  0x15   :  { %s1820_s9 = smov 128   ;;  %s1821_s10 = smov 8  }
  0x16   :  { %39 = dma.hbm_to_vmem [thread:$0]  %s2236_s2, 512, %s34_s27, [#allocation7], %s1820_s9, %s1820_s9, %s1821_s10  }
  0x17   :  { %1812 = dma.done.wait [#allocation4], 128  }
  0x18   :  { %1813 = vsyncadd [#allocation4], 4294967168 }
  0x19   :  { %1814 = dma.done.wait [#allocation7], 512  }
  0x1a   :  { %1815 = vsyncadd [#allocation7], 4294966784  ;;  %v54_v0 = vlaneseq  ;;  %v1822_v1 = vmov 0.0   ;;  %vm1823_vm0 = vmmov 0   ;;  %v1824_v4 = vmov 0   ;;  %v67_v10 = vld [vmem:[#allocation6 + $0x18] sm:$0xff] }
  0x1b   :  { %1536 = vmatprep.subr.mxu0 %v1822_v1  ;;  %1544 = vmatprep.mubr.msk.f32.mxu0 %vm1823_vm0, %v1822_v1  ;;  %v1825_v5 = vmov 0.5   ;;  %v60_v8 = vld [vmem:[%s2238_s4] sm:$0x1]  ;;  %v66_v11 = vld [vmem:[#allocation6 + $0x10] sm:$0xff]  ;;  %v65_v14 = vld [vmem:[#allocation6 + $0x8] sm:$0xff]  ;;  %v1828_v41 = vmov 1  }
  0x1c   :  { %v55_v2 = vand.u32 127, %v54_v0  ;;  %v70_v3 = vshrl.u32 %v54_v0, 7  ;;  %1691 = vset.pattern.permute.xlu0 %v1824_v4  ;;  %1547 = vmatprep.subr.mxu1 %v1822_v1  ;;  %v1896_v12 = vld [vmem:[#allocation3] sm:$0xff]  ;;  %v64_v17 = vld [vmem:[#allocation6] sm:$0xff]  ;;  %vm95_vm4 = vcmask 261120   ;;  %v1829_v60 = vmov 2  }
  0x1d   :  { %1555 = vmatprep.mubr.msk.f32.mxu1 %vm1823_vm0, %v1822_v1  ;;  %85 = vperm.xlu0 %1691, %v1896_v12   ;;  %v62_v20 = vld [vmem:[%s2235_s1] sm:$0x1]  ;;  %s1826_s1 = smov 64   ;;  %s1839_s18 = smov 96   ;;  %vm214_vm5 = vcmask 7168   ;;  %vm326_vm6 = vcmask 15368  }
  0x1e   :  { %vm56_vm1 = vcmp.ge.s32.totalorder %v55_v2, 64  ;;  %vm57_vm2 = vcmp.lt.s32.totalorder %v55_v2, 96  ;;  %v71_v7 = vsub.s32 0, %v70_v3  ;;  %v78_v22 = vld [vmem:[%s2237_s3] sm:$0x1]  ;;  %s1827_s3 = smov 32   ;;  %1692 = vset.pattern.permute.xlu1 %v1828_v41 }
  0x1f   :  { %vm58_vm3 = vmand %vm56_vm1, %vm57_vm2  ;;  %vm438_vm7 = vcmask 23568   ;;  %vm550_vm8 = vcmask 31768   ;;  %vm662_vm9 = vcmask 39968   ;;  %vm774_vm10 = vcmask 48168  }
  0x20   :  { %v59_v6 = vsel %vm58_vm3, 1.0, %v1825_v5  ;;  %vm886_vm11 = vcmask 56368   ;;  %vm998_vm12 = vcmask 64568   ;;  %vm1110_vm13 = vcmask 72768  }
  0x21   :  { %v61_v9 = vmul.f32 %v60_v8, %v59_v6  ;;  %v79_v25 = vmul.f32 %v78_v22, %v59_v6  ;;  %1693 = vset.pattern.permute.xlu0 %v1829_v60  ;;  %vm1222_vm14 = vcmask 80968   ;;  %vm1334_vm15 = vcmask 89168  }
  0x23   :  { %v72_v13 = vrot.slane %v61_v9, %v71_v7  ;;  %v63_v21 = vmul.f32 %v62_v20, %v61_v9  ;;  %v1943_v27 = vrot.slane %v79_v25, %v71_v7 }
  0x25   :  { %v1899_v15 = vmul.f32 %v72_v13, %v67_v10  ;;  %v1901_v16 = vmul.f32 %v72_v13, %v66_v11  ;;  %v1904_v18 = vmul.f32 %v72_v13, %v65_v14  ;;  %v1910_v19 = vmul.f32 %v72_v13, %v64_v17 }
  0x26   :  { %v1940_v23 = vrot.slane %v63_v21, %v71_v7  ;;  %v1830_v21 = vmov 3  }
  0x27   :  { %1537 = vmatpush3.msra.mxu0 %v1899_v15  ;;  %1548 = vmatpush3.msra.mxu1 %v1899_v15 }
  0x28   :  { %1538 = vmatprep.subr.mxu0 %v1822_v1  ;;  %1549 = vmatprep.subr.mxu1 %v1822_v1 }
  0x29   :  { %1539 = vmatpush3.msra.mxu0 %v1901_v16  ;;  %1550 = vmatpush3.msra.mxu1 %v1901_v16 }
  0x2a   :  { %1540 = vmatprep.subr.mxu0 %v1822_v1  ;;  %1551 = vmatprep.subr.mxu1 %v1822_v1 }
  0x2b   :  { %1541 = vmatpush3.msra.mxu0 %v1904_v18  ;;  %1552 = vmatpush3.msra.mxu1 %v1904_v18 }
  0x2c   :  { %1542 = vmatprep.subr.mxu0 %v1822_v1  ;;  %1553 = vmatprep.subr.mxu1 %v1822_v1 }
  0x2d   :  { %1543 = vmatpush3.msra.mxu0 %v1910_v19  ;;  %1554 = vmatpush3.msra.mxu1 %v1910_v19 }
  0x2e   :  { %1545 = vmatmul.mubr.f32.vlgmr.msra.gmra.mxu0 %v1822_v1  ;;  %1558 = vmatprep.subr.mxu0 %v1822_v1 }
  0x2f   :  { %1559 = vmatpush3.msra.mxu0 %v1899_v15  ;;  %1566 = vmatprep.mubr.msk.f32.mxu0 %vm1823_vm0, %v1822_v1 }
  0x30   :  { %1560 = vmatprep.subr.mxu0 %v1822_v1  ;;  %1569 = vmatprep.subr.mxu1 %v1822_v1 }
  0x31   :  { %1561 = vmatpush3.msra.mxu0 %v1901_v16 }
  0x32   :  { %1562 = vmatprep.subr.mxu0 %v1822_v1 }
  0x33   :  { %1563 = vmatpush3.msra.mxu0 %v1904_v18 }
  0x34   :  { %1564 = vmatprep.subr.mxu0 %v1822_v1 }
  0x35   :  { %1565 = vmatpush3.msra.mxu0 %v1910_v19 }
  0x36   :  { %1580 = vmatprep.subr.mxu0 %v1822_v1 }
  0x98   :  { %v86_v24 = vpop.permute.xlu0 %85 }
  0x99   :  { %v94_v26 = vmul.f32 %v1940_v23, %v86_v24 }
  0xee   :  { %v165_v28 = vpop.f32.mrf.mxu0 }
  0xef   :  { %v166_v29 = vadd.f32 %v165_v28, %v94_v26 }
  0xf0   :  { %v1546_v30 = vpop.f32.mrf.mxu0 }
  0xf1   :  { %v175_v31 = vadd.f32 %v1943_v27, %v166_v29 }
  0xf3   :  { %1704 = vtanh.f32 %v175_v31 }
 0x100   :  { %v1705_v32 = vpop.eup %1704 }
 0x101   :  { %181 = vrot.lane.b32.xlu0 %v1705_v32, %s1826_s1  ;;  %v177_v33 = vmul.f32 0.5, %v1705_v32 }
 0x103   :  { %v178_v34 = vadd.f32 0.5, %v177_v33 }
 0x105   :  { %v179_v37 = vmul.f32 0.0, %v178_v34 }
 0x173   :  { %v182_v35 = vpop.permute.xlu0 %181 }
 0x174   :  { %v184_v36 = vmul.f32 %v182_v35, %v178_v34 }
 0x176   :  { %186 = vrot.lane.b32.xlu1 %v184_v36, %s1827_s3 }
 0x1e8   :  { %v187_v38 = vpop.permute.xlu1 %186 }
 0x1e9   :  { %v189_v39 = vadd.f32 %v187_v38, %v179_v37 }
 0x1eb   :  { %1706 = vtanh.f32 %v189_v39 }
 0x1f8   :  { %v1707_v40 = vpop.eup %1706 }
 0x1f9   :  { %192 = vrot.lane.b32.xlu1 %v1707_v40, %s1826_s1 }
 0x1fd   :  { %217 = vperm.xlu1 %1692, %v1896_v12  }
 0x26b   :  { %v193_v42 = vpop.permute.xlu1 %192 }
 0x26c   :  { %v1950_v43 = vmul.f32 %v193_v42, %v178_v34  ;;  %v1831_v42 = vmov 4  }
 0x26e   :  { %222 = vrot.lane.b32.xlu0 %v1950_v43, %s1827_s3 }
 0x278   :  { %v218_v45 = vpop.permute.xlu1 %217 }
 0x279   :  { %v220_v46 = vmul.f32 %v218_v45, %v1940_v23 }
 0x2e0   :  { %v223_v44 = vpop.permute.xlu0 %222 }
 0x2e1   :  { %1556 = vmatmul.mubr.msk.f32.vlgmr.msra.gmra.mxu1 %vm95_vm4, %v223_v44 }
 0x2e2   :  { %1570 = vmatpush3.msra.mxu1 %v1899_v15  ;;  %1577 = vmatprep.mubr.msk.f32.mxu1 %vm1823_vm0, %v1822_v1 }
 0x2e3   :  { %1571 = vmatprep.subr.mxu1 %v1822_v1 }
 0x2e4   :  { %1572 = vmatpush3.msra.mxu1 %v1901_v16 }
 0x2e5   :  { %1573 = vmatprep.subr.mxu1 %v1822_v1 }
 0x2e6   :  { %1574 = vmatpush3.msra.mxu1 %v1904_v18 }
 0x2e7   :  { %1575 = vmatprep.subr.mxu1 %v1822_v1 }
 0x2e8   :  { %1576 = vmatpush3.msra.mxu1 %v1910_v19 }
 0x2e9   :  { %1591 = vmatprep.subr.mxu1 %v1822_v1 }
 0x3a1   :  { %v292_v47 = vpop.f32.mrf.mxu1 }
 0x3a2   :  { %v293_v48 = vadd.f32 %v292_v47, %v220_v46 }
 0x3a3   :  { %v1557_v49 = vpop.f32.mrf.mxu1 }
 0x3a4   :  { %v296_v50 = vadd.f32 %v293_v48, %v1943_v27 }
 0x3a6   :  { %1708 = vtanh.f32 %v296_v50 }
 0x3b3   :  { %v1709_v51 = vpop.eup %1708 }
 0x3b4   :  { %302 = vrot.lane.b32.xlu0 %v1709_v51, %s1826_s1  ;;  %v298_v52 = vmul.f32 0.5, %v1709_v51 }
 0x3b6   :  { %v299_v53 = vadd.f32 0.5, %v298_v52 }
 0x3b8   :  { %v300_v56 = vmul.f32 %v299_v53, %v189_v39 }
 0x426   :  { %v303_v54 = vpop.permute.xlu0 %302 }
 0x427   :  { %v305_v55 = vmul.f32 %v303_v54, %v299_v53 }
 0x429   :  { %307 = vrot.lane.b32.xlu1 %v305_v55, %s1827_s3 }
 0x49b   :  { %v308_v57 = vpop.permute.xlu1 %307 }
 0x49c   :  { %v310_v58 = vadd.f32 %v308_v57, %v300_v56 }
 0x49e   :  { %1710 = vtanh.f32 %v310_v58 }
 0x4ab   :  { %v1711_v59 = vpop.eup %1710 }
 0x4ac   :  { %313 = vrot.lane.b32.xlu0 %v1711_v59, %s1826_s1 }
 0x4b0   :  { %329 = vperm.xlu0 %1693, %v1896_v12  }
 0x4b4   :  { %1694 = vset.pattern.permute.xlu0 %v1830_v21 }
 0x51e   :  { %v314_v61 = vpop.permute.xlu0 %313 }
 0x51f   :  { %v1971_v62 = vmul.f32 %v314_v61, %v299_v53 }
 0x521   :  { %334 = vrot.lane.b32.xlu1 %v1971_v62, %s1827_s3 }
 0x52b   :  { %v330_v0 = vpop.permute.xlu0 %329 }
 0x52c   :  { %v332_v2 = vmul.f32 %v330_v0, %v1940_v23 }
 0x593   :  { %v335_v63 = vpop.permute.xlu1 %334 }
 0x594   :  { %1567 = vmatmul.mubr.msk.f32.vlgmr.msra.gmra.mxu0 %vm95_vm4, %v335_v63  ;;  %v1832_v63 = vmov 5  }
 0x595   :  { %1581 = vmatpush3.msra.mxu0 %v1899_v15  ;;  %1588 = vmatprep.mubr.msk.f32.mxu0 %vm1823_vm0, %v1822_v1 }
 0x596   :  { %1582 = vmatprep.subr.mxu0 %v1822_v1 }
 0x597   :  { %1583 = vmatpush3.msra.mxu0 %v1901_v16 }
 0x598   :  { %1584 = vmatprep.subr.mxu0 %v1822_v1 }
 0x599   :  { %1585 = vmatpush3.msra.mxu0 %v1904_v18 }
 0x59a   :  { %1586 = vmatprep.subr.mxu0 %v1822_v1 }
 0x59b   :  { %1587 = vmatpush3.msra.mxu0 %v1910_v19 }
 0x59c   :  { %1602 = vmatprep.subr.mxu0 %v1822_v1 }
 0x654   :  { %v404_v3 = vpop.f32.mrf.mxu0 }
 0x655   :  { %v405_v4 = vadd.f32 %v404_v3, %v332_v2 }
 0x656   :  { %v1568_v5 = vpop.f32.mrf.mxu0 }
 0x657   :  { %v408_v6 = vadd.f32 %v405_v4, %v1943_v27 }
 0x659   :  { %1712 = vtanh.f32 %v408_v6 }
 0x666   :  { %v1713_v7 = vpop.eup %1712 }
 0x667   :  { %414 = vrot.lane.b32.xlu1 %v1713_v7, %s1826_s1  ;;  %v410_v8 = vmul.f32 0.5, %v1713_v7 }
 0x669   :  { %v411_v9 = vadd.f32 0.5, %v410_v8 }
 0x66b   :  { %v412_v13 = vmul.f32 %v411_v9, %v310_v58 }
 0x6d9   :  { %v415_v10 = vpop.permute.xlu1 %414 }
 0x6da   :  { %v417_v11 = vmul.f32 %v415_v10, %v411_v9 }
 0x6dc   :  { %419 = vrot.lane.b32.xlu1 %v417_v11, %s1827_s3 }
 0x74e   :  { %v420_v14 = vpop.permute.xlu1 %419 }
 0x74f   :  { %v422_v17 = vadd.f32 %v420_v14, %v412_v13 }
 0x751   :  { %1714 = vtanh.f32 %v422_v17 }
 0x75e   :  { %v1715_v20 = vpop.eup %1714 }
 0x75f   :  { %425 = vrot.lane.b32.xlu0 %v1715_v20, %s1826_s1 }
 0x763   :  { %441 = vperm.xlu0 %1694, %v1896_v12  }
 0x767   :  { %1695 = vset.pattern.permute.xlu0 %v1831_v42 }
 0x7d1   :  { %v426_v22 = vpop.permute.xlu0 %425 }
 0x7d2   :  { %v1992_v24 = vmul.f32 %v426_v22, %v411_v9 }
 0x7d4   :  { %446 = vrot.lane.b32.xlu1 %v1992_v24, %s1827_s3 }
 0x7de   :  { %v442_v26 = vpop.permute.xlu0 %441 }
 0x7df   :  { %v444_v28 = vmul.f32 %v442_v26, %v1940_v23  ;;  %v1833_v26 = vmov 6  }
 0x846   :  { %v447_v25 = vpop.permute.xlu1 %446 }
 0x847   :  { %1578 = vmatmul.mubr.msk.f32.vlgmr.msra.gmra.mxu1 %vm95_vm4, %v447_v25 }
 0x848   :  { %1592 = vmatpush3.msra.mxu1 %v1899_v15  ;;  %1599 = vmatprep.mubr.msk.f32.mxu1 %vm1823_vm0, %v1822_v1 }
 0x849   :  { %1593 = vmatprep.subr.mxu1 %v1822_v1 }
 0x84a   :  { %1594 = vmatpush3.msra.mxu1 %v1901_v16 }
 0x84b   :  { %1595 = vmatprep.subr.mxu1 %v1822_v1 }
 0x84c   :  { %1596 = vmatpush3.msra.mxu1 %v1904_v18 }
 0x84d   :  { %1597 = vmatprep.subr.mxu1 %v1822_v1 }
 0x84e   :  { %1598 = vmatpush3.msra.mxu1 %v1910_v19 }
 0x84f   :  { %1613 = vmatprep.subr.mxu1 %v1822_v1 }
 0x907   :  { %v516_v29 = vpop.f32.mrf.mxu1 }
 0x908   :  { %v517_v30 = vadd.f32 %v516_v29, %v444_v28 }
 0x909   :  { %v1579_v31 = vpop.f32.mrf.mxu1 }
 0x90a   :  { %v520_v32 = vadd.f32 %v517_v30, %v1943_v27 }
 0x90c   :  { %1716 = vtanh.f32 %v520_v32 }
 0x919   :  { %v1717_v33 = vpop.eup %1716 }
 0x91a   :  { %526 = vrot.lane.b32.xlu1 %v1717_v33, %s1826_s1  ;;  %v522_v34 = vmul.f32 0.5, %v1717_v33 }
 0x91c   :  { %v523_v35 = vadd.f32 0.5, %v522_v34 }
 0x91e   :  { %v524_v38 = vmul.f32 %v523_v35, %v422_v17 }
 0x98c   :  { %v527_v36 = vpop.permute.xlu1 %526 }
 0x98d   :  { %v529_v37 = vmul.f32 %v527_v36, %v523_v35 }
 0x98f   :  { %531 = vrot.lane.b32.xlu1 %v529_v37, %s1827_s3 }
 0xa01   :  { %v532_v39 = vpop.permute.xlu1 %531 }
 0xa02   :  { %v534_v40 = vadd.f32 %v532_v39, %v524_v38 }
 0xa04   :  { %1718 = vtanh.f32 %v534_v40 }
 0xa11   :  { %v1719_v41 = vpop.eup %1718 }
 0xa12   :  { %537 = vrot.lane.b32.xlu0 %v1719_v41, %s1826_s1 }
 0xa16   :  { %553 = vperm.xlu0 %1695, %v1896_v12  }
 0xa1a   :  { %1696 = vset.pattern.permute.xlu0 %v1832_v63 }
 0xa84   :  { %v538_v44 = vpop.permute.xlu0 %537 }
 0xa85   :  { %v2013_v45 = vmul.f32 %v538_v44, %v523_v35 }
 0xa87   :  { %558 = vrot.lane.b32.xlu1 %v2013_v45, %s1827_s3 }
 0xa91   :  { %v554_v47 = vpop.permute.xlu0 %553 }
 0xa92   :  { %v556_v48 = vmul.f32 %v554_v47, %v1940_v23 }
 0xaf9   :  { %v559_v46 = vpop.permute.xlu1 %558 }
 0xafa   :  { %1589 = vmatmul.mubr.msk.f32.vlgmr.msra.gmra.mxu0 %vm95_vm4, %v559_v46 }
 0xafb   :  { %1603 = vmatpush3.msra.mxu0 %v1899_v15  ;;  %1610 = vmatprep.mubr.msk.f32.mxu0 %vm1823_vm0, %v1822_v1 }
 0xafc   :  { %1604 = vmatprep.subr.mxu0 %v1822_v1 }
 0xafd   :  { %1605 = vmatpush3.msra.mxu0 %v1901_v16 }
 0xafe   :  { %1606 = vmatprep.subr.mxu0 %v1822_v1 }
 0xaff   :  { %1607 = vmatpush3.msra.mxu0 %v1904_v18 }
 0xb00   :  { %1608 = vmatprep.subr.mxu0 %v1822_v1 }
 0xb01   :  { %1609 = vmatpush3.msra.mxu0 %v1910_v19 }
 0xb02   :  { %1624 = vmatprep.subr.mxu0 %v1822_v1 }
 0xbba   :  { %v628_v49 = vpop.f32.mrf.mxu0 }
 0xbbb   :  { %v629_v50 = vadd.f32 %v628_v49, %v556_v48  ;;  %v1834_v48 = vmov 7  }
 0xbbc   :  { %v1590_v51 = vpop.f32.mrf.mxu0 }
 0xbbd   :  { %v632_v52 = vadd.f32 %v629_v50, %v1943_v27 }
 0xbbf   :  { %1720 = vtanh.f32 %v632_v52 }
 0xbcc   :  { %v1721_v53 = vpop.eup %1720 }
 0xbcd   :  { %638 = vrot.lane.b32.xlu1 %v1721_v53, %s1826_s1  ;;  %v634_v54 = vmul.f32 0.5, %v1721_v53 }
 0xbcf   :  { %v635_v55 = vadd.f32 0.5, %v634_v54 }
 0xbd1   :  { %v636_v58 = vmul.f32 %v635_v55, %v534_v40 }
 0xc3f   :  { %v639_v56 = vpop.permute.xlu1 %638 }
 0xc40   :  { %v641_v57 = vmul.f32 %v639_v56, %v635_v55 }
 0xc42   :  { %643 = vrot.lane.b32.xlu1 %v641_v57, %s1827_s3 }
 0xcb4   :  { %v644_v59 = vpop.permute.xlu1 %643 }
 0xcb5   :  { %v646_v60 = vadd.f32 %v644_v59, %v636_v58 }
 0xcb7   :  { %1722 = vtanh.f32 %v646_v60 }
 0xcc4   :  { %v1723_v61 = vpop.eup %1722 }
 0xcc5   :  { %649 = vrot.lane.b32.xlu0 %v1723_v61, %s1826_s1 }
 0xcc9   :  { %665 = vperm.xlu0 %1696, %v1896_v12  }
 0xccd   :  { %1697 = vset.pattern.permute.xlu0 %v1833_v26 }
 0xd37   :  { %v650_v0 = vpop.permute.xlu0 %649 }
 0xd38   :  { %v2034_v2 = vmul.f32 %v650_v0, %v635_v55 }
 0xd3a   :  { %670 = vrot.lane.b32.xlu1 %v2034_v2, %s1827_s3 }
 0xd44   :  { %v666_v4 = vpop.permute.xlu0 %665 }
 0xd45   :  { %v668_v5 = vmul.f32 %v666_v4, %v1940_v23 }
 0xdac   :  { %v671_v3 = vpop.permute.xlu1 %670 }
 0xdad   :  { %1600 = vmatmul.mubr.msk.f32.vlgmr.msra.gmra.mxu1 %vm95_vm4, %v671_v3 }
 0xdae   :  { %1614 = vmatpush3.msra.mxu1 %v1899_v15  ;;  %1621 = vmatprep.mubr.msk.f32.mxu1 %vm1823_vm0, %v1822_v1 }
 0xdaf   :  { %1615 = vmatprep.subr.mxu1 %v1822_v1 }
 0xdb0   :  { %1616 = vmatpush3.msra.mxu1 %v1901_v16 }
 0xdb1   :  { %1617 = vmatprep.subr.mxu1 %v1822_v1 }
 0xdb2   :  { %1618 = vmatpush3.msra.mxu1 %v1904_v18 }
 0xdb3   :  { %1619 = vmatprep.subr.mxu1 %v1822_v1 }
 0xdb4   :  { %1620 = vmatpush3.msra.mxu1 %v1910_v19 }
 0xdb5   :  { %1635 = vmatprep.subr.mxu1 %v1822_v1 }
 0xe6d   :  { %v740_v6 = vpop.f32.mrf.mxu1 }
 0xe6e   :  { %v741_v7 = vadd.f32 %v740_v6, %v668_v5  ;;  %v1835_v6 = vmov 8  }
 0xe6f   :  { %v1601_v8 = vpop.f32.mrf.mxu1 }
 0xe70   :  { %v744_v9 = vadd.f32 %v741_v7, %v1943_v27 }
 0xe72   :  { %1724 = vtanh.f32 %v744_v9 }
 0xe7f   :  { %v1725_v10 = vpop.eup %1724 }
 0xe80   :  { %750 = vrot.lane.b32.xlu1 %v1725_v10, %s1826_s1  ;;  %v746_v11 = vmul.f32 0.5, %v1725_v10 }
 0xe82   :  { %v747_v13 = vadd.f32 0.5, %v746_v11 }
 0xe84   :  { %v748_v20 = vmul.f32 %v747_v13, %v646_v60 }
 0xef2   :  { %v751_v14 = vpop.permute.xlu1 %750 }
 0xef3   :  { %v753_v17 = vmul.f32 %v751_v14, %v747_v13 }
 0xef5   :  { %755 = vrot.lane.b32.xlu1 %v753_v17, %s1827_s3 }
 0xf67   :  { %v756_v21 = vpop.permute.xlu1 %755 }
 0xf68   :  { %v758_v22 = vadd.f32 %v756_v21, %v748_v20 }
 0xf6a   :  { %1726 = vtanh.f32 %v758_v22 }
 0xf77   :  { %v1727_v25 = vpop.eup %1726 }
 0xf78   :  { %761 = vrot.lane.b32.xlu0 %v1727_v25, %s1826_s1 }
 0xf7c   :  { %777 = vperm.xlu0 %1697, %v1896_v12  }
 0xf80   :  { %1698 = vset.pattern.permute.xlu0 %v1834_v48 }
 0xfea   :  { %v762_v28 = vpop.permute.xlu0 %761 }
 0xfeb   :  { %v2055_v29 = vmul.f32 %v762_v28, %v747_v13 }
 0xfed   :  { %782 = vrot.lane.b32.xlu1 %v2055_v29, %s1827_s3 }
 0xff7   :  { %v778_v31 = vpop.permute.xlu0 %777 }
 0xff8   :  { %v780_v32 = vmul.f32 %v778_v31, %v1940_v23 }
0x105f   :  { %v783_v30 = vpop.permute.xlu1 %782 }
0x1060   :  { %1611 = vmatmul.mubr.msk.f32.vlgmr.msra.gmra.mxu0 %vm95_vm4, %v783_v30 }
0x1061   :  { %1625 = vmatpush3.msra.mxu0 %v1899_v15  ;;  %1632 = vmatprep.mubr.msk.f32.mxu0 %vm1823_vm0, %v1822_v1 }
0x1062   :  { %1626 = vmatprep.subr.mxu0 %v1822_v1 }
0x1063   :  { %1627 = vmatpush3.msra.mxu0 %v1901_v16 }
0x1064   :  { %1628 = vmatprep.subr.mxu0 %v1822_v1 }
0x1065   :  { %1629 = vmatpush3.msra.mxu0 %v1904_v18 }
0x1066   :  { %1630 = vmatprep.subr.mxu0 %v1822_v1 }
0x1067   :  { %1631 = vmatpush3.msra.mxu0 %v1910_v19 }
0x1068   :  { %1646 = vmatprep.subr.mxu0 %v1822_v1 }
0x1120   :  { %v852_v33 = vpop.f32.mrf.mxu0 }
0x1121   :  { %v853_v34 = vadd.f32 %v852_v33, %v780_v32 }
0x1122   :  { %v1612_v35 = vpop.f32.mrf.mxu0 }
0x1123   :  { %v856_v36 = vadd.f32 %v853_v34, %v1943_v27  ;;  %v1836_v34 = vmov 9  }
0x1125   :  { %1728 = vtanh.f32 %v856_v36 }
0x1132   :  { %v1729_v37 = vpop.eup %1728 }
0x1133   :  { %862 = vrot.lane.b32.xlu1 %v1729_v37, %s1826_s1  ;;  %v858_v38 = vmul.f32 0.5, %v1729_v37 }
0x1135   :  { %v859_v39 = vadd.f32 0.5, %v858_v38 }
0x1137   :  { %v860_v42 = vmul.f32 %v859_v39, %v758_v22 }
0x11a5   :  { %v863_v40 = vpop.permute.xlu1 %862 }
0x11a6   :  { %v865_v41 = vmul.f32 %v863_v40, %v859_v39 }
0x11a8   :  { %867 = vrot.lane.b32.xlu1 %v865_v41, %s1827_s3 }
0x121a   :  { %v868_v44 = vpop.permute.xlu1 %867 }
0x121b   :  { %v870_v46 = vadd.f32 %v868_v44, %v860_v42 }
0x121d   :  { %1730 = vtanh.f32 %v870_v46 }
0x122a   :  { %v1731_v47 = vpop.eup %1730 }
0x122b   :  { %873 = vrot.lane.b32.xlu0 %v1731_v47, %s1826_s1 }
0x122f   :  { %889 = vperm.xlu0 %1698, %v1896_v12  }
0x1233   :  { %1699 = vset.pattern.permute.xlu0 %v1835_v6 }
0x129d   :  { %v874_v49 = vpop.permute.xlu0 %873 }
0x129e   :  { %v2076_v50 = vmul.f32 %v874_v49, %v859_v39 }
0x12a0   :  { %894 = vrot.lane.b32.xlu1 %v2076_v50, %s1827_s3 }
0x12aa   :  { %v890_v52 = vpop.permute.xlu0 %889 }
0x12ab   :  { %v892_v53 = vmul.f32 %v890_v52, %v1940_v23 }
0x1312   :  { %v895_v51 = vpop.permute.xlu1 %894 }
0x1313   :  { %1622 = vmatmul.mubr.msk.f32.vlgmr.msra.gmra.mxu1 %vm95_vm4, %v895_v51  ;;  %v1837_v51 = vmov 10  }
0x1314   :  { %1636 = vmatpush3.msra.mxu1 %v1899_v15  ;;  %1643 = vmatprep.mubr.msk.f32.mxu1 %vm1823_vm0, %v1822_v1 }
0x1315   :  { %1637 = vmatprep.subr.mxu1 %v1822_v1 }
0x1316   :  { %1638 = vmatpush3.msra.mxu1 %v1901_v16 }
0x1317   :  { %1639 = vmatprep.subr.mxu1 %v1822_v1 }
0x1318   :  { %1640 = vmatpush3.msra.mxu1 %v1904_v18 }
0x1319   :  { %1641 = vmatprep.subr.mxu1 %v1822_v1 }
0x131a   :  { %1642 = vmatpush3.msra.mxu1 %v1910_v19 }
0x131b   :  { %1657 = vmatprep.subr.mxu1 %v1822_v1 }
0x13d3   :  { %v964_v54 = vpop.f32.mrf.mxu1 }
0x13d4   :  { %v965_v55 = vadd.f32 %v964_v54, %v892_v53 }
0x13d5   :  { %v1623_v56 = vpop.f32.mrf.mxu1 }
0x13d6   :  { %v968_v57 = vadd.f32 %v965_v55, %v1943_v27 }
0x13d8   :  { %1732 = vtanh.f32 %v968_v57 }
0x13e5   :  { %v1733_v58 = vpop.eup %1732 }
0x13e6   :  { %974 = vrot.lane.b32.xlu1 %v1733_v58, %s1826_s1  ;;  %v970_v59 = vmul.f32 0.5, %v1733_v58 }
0x13e8   :  { %v971_v60 = vadd.f32 0.5, %v970_v59 }
0x13ea   :  { %v972_v0 = vmul.f32 %v971_v60, %v870_v46 }
0x1458   :  { %v975_v61 = vpop.permute.xlu1 %974 }
0x1459   :  { %v977_v63 = vmul.f32 %v975_v61, %v971_v60 }
0x145b   :  { %979 = vrot.lane.b32.xlu1 %v977_v63, %s1827_s3 }
0x14cd   :  { %v980_v3 = vpop.permute.xlu1 %979 }
0x14ce   :  { %v982_v4 = vadd.f32 %v980_v3, %v972_v0 }
0x14d0   :  { %1734 = vtanh.f32 %v982_v4 }
0x14dd   :  { %v1735_v5 = vpop.eup %1734 }
0x14de   :  { %985 = vrot.lane.b32.xlu0 %v1735_v5, %s1826_s1 }
0x14e2   :  { %1001 = vperm.xlu0 %1699, %v1896_v12  }
0x14e6   :  { %1700 = vset.pattern.permute.xlu0 %v1836_v34 }
0x1550   :  { %v986_v7 = vpop.permute.xlu0 %985 }
0x1551   :  { %v2097_v8 = vmul.f32 %v986_v7, %v971_v60 }
0x1553   :  { %1006 = vrot.lane.b32.xlu1 %v2097_v8, %s1827_s3 }
0x155d   :  { %v1002_v10 = vpop.permute.xlu0 %1001 }
0x155e   :  { %v1004_v11 = vmul.f32 %v1002_v10, %v1940_v23 }
0x15c5   :  { %v1007_v9 = vpop.permute.xlu1 %1006 }
0x15c6   :  { %1633 = vmatmul.mubr.msk.f32.vlgmr.msra.gmra.mxu0 %vm95_vm4, %v1007_v9  ;;  %v1838_v9 = vmov 11  }
0x15c7   :  { %1647 = vmatpush3.msra.mxu0 %v1899_v15  ;;  %1654 = vmatprep.mubr.msk.f32.mxu0 %vm1823_vm0, %v1822_v1 }
0x15c8   :  { %1648 = vmatprep.subr.mxu0 %v1822_v1  ;;  %1702 = vset.pattern.permute.xlu1 %v1838_v9 }
0x15c9   :  { %1649 = vmatpush3.msra.mxu0 %v1901_v16 }
0x15ca   :  { %1650 = vmatprep.subr.mxu0 %v1822_v1 }
0x15cb   :  { %1651 = vmatpush3.msra.mxu0 %v1904_v18 }
0x15cc   :  { %1652 = vmatprep.subr.mxu0 %v1822_v1 }
0x15cd   :  { %1653 = vmatpush3.msra.mxu0 %v1910_v19 }
0x1686   :  { %v1076_v13 = vpop.f32.mrf.mxu0 }
0x1687   :  { %v1077_v14 = vadd.f32 %v1076_v13, %v1004_v11  ;;  %v1464_v11 = vld [vmem:[%s2239_s5] ss:$0 sm:$0xff] }
0x1688   :  { %v1634_v17 = vpop.f32.mrf.mxu0 }
0x1689   :  { %v1080_v20 = vadd.f32 %v1077_v14, %v1943_v27 }
0x168b   :  { %1736 = vtanh.f32 %v1080_v20 }
0x1698   :  { %v1737_v21 = vpop.eup %1736 }
0x1699   :  { %1086 = vrot.lane.b32.xlu1 %v1737_v21, %s1826_s1  ;;  %v1082_v22 = vmul.f32 0.5, %v1737_v21 }
0x169b   :  { %v1083_v25 = vadd.f32 0.5, %v1082_v22 }
0x169d   :  { %v1084_v30 = vmul.f32 %v1083_v25, %v982_v4 }
0x170b   :  { %v1087_v26 = vpop.permute.xlu1 %1086 }
0x170c   :  { %v1089_v28 = vmul.f32 %v1087_v26, %v1083_v25 }
0x170e   :  { %1091 = vrot.lane.b32.xlu1 %v1089_v28, %s1827_s3 }
0x1780   :  { %v1092_v31 = vpop.permute.xlu1 %1091 }
0x1781   :  { %v1094_v32 = vadd.f32 %v1092_v31, %v1084_v30 }
0x1783   :  { %1738 = vtanh.f32 %v1094_v32 }
0x1790   :  { %v1739_v33 = vpop.eup %1738 }
0x1791   :  { %1097 = vrot.lane.b32.xlu0 %v1739_v33, %s1826_s1 }
0x1795   :  { %1113 = vperm.xlu0 %1700, %v1896_v12  }
0x1799   :  { %1701 = vset.pattern.permute.xlu0 %v1837_v51 }
0x1803   :  { %v1098_v35 = vpop.permute.xlu0 %1097 }
0x1804   :  { %v2117_v36 = vmul.f32 %v1098_v35, %v1083_v25 }
0x1806   :  { %1118 = vrot.lane.b32.xlu1 %v2117_v36, %s1827_s3 }
0x1810   :  { %v1114_v38 = vpop.permute.xlu0 %1113 }
0x1811   :  { %v1116_v39 = vmul.f32 %v1114_v38, %v1940_v23 }
0x1878   :  { %v1119_v37 = vpop.permute.xlu1 %1118 }
0x1879   :  { %1644 = vmatmul.mubr.msk.f32.vlgmr.msra.gmra.mxu1 %vm95_vm4, %v1119_v37 }
0x187a   :  { %1658 = vmatpush3.msra.mxu1 %v1899_v15  ;;  %1665 = vmatprep.mubr.msk.f32.mxu1 %vm1823_vm0, %v1822_v1  ;;  %vm1446_vm0 = vcmask 97368  }
0x187b   :  { %1659 = vmatprep.subr.mxu1 %v1822_v1 }
0x187c   :  { %1660 = vmatpush3.msra.mxu1 %v1901_v16 }
0x187d   :  { %1661 = vmatprep.subr.mxu1 %v1822_v1 }
0x187e   :  { %1662 = vmatpush3.msra.mxu1 %v1904_v18 }
0x187f   :  { %1663 = vmatprep.subr.mxu1 %v1822_v1 }
0x1880   :  { %1664 = vmatpush3.msra.mxu1 %v1910_v19 }
0x1939   :  { %v1188_v40 = vpop.f32.mrf.mxu1 }
0x193a   :  { %v1189_v15 = vadd.f32 %v1188_v40, %v1116_v39 }
0x193b   :  { %v1645_v41 = vpop.f32.mrf.mxu1 }
0x193c   :  { %v1192_v42 = vadd.f32 %v1189_v15, %v1943_v27 }
0x193e   :  { %1740 = vtanh.f32 %v1192_v42 }
0x194b   :  { %v1741_v44 = vpop.eup %1740 }
0x194c   :  { %1198 = vrot.lane.b32.xlu1 %v1741_v44, %s1826_s1  ;;  %v1194_v16 = vmul.f32 0.5, %v1741_v44 }
0x194e   :  { %v1195_v46 = vadd.f32 0.5, %v1194_v16 }
0x1950   :  { %v1196_v1 = vmul.f32 %v1195_v46, %v1094_v32 }
0x19be   :  { %v1199_v47 = vpop.permute.xlu1 %1198 }
0x19bf   :  { %v1201_v18 = vmul.f32 %v1199_v47, %v1195_v46 }
0x19c1   :  { %1203 = vrot.lane.b32.xlu1 %v1201_v18, %s1827_s3 }
0x1a33   :  { %v1204_v19 = vpop.permute.xlu1 %1203 }
0x1a34   :  { %v1206_v48 = vadd.f32 %v1204_v19, %v1196_v1 }
0x1a36   :  { %1742 = vtanh.f32 %v1206_v48 }
0x1a43   :  { %v1743_v49 = vpop.eup %1742 }
0x1a44   :  { %1209 = vrot.lane.b32.xlu0 %v1743_v49, %s1826_s1 }
0x1a48   :  { %1225 = vperm.xlu0 %1701, %v1896_v12  }
0x1a4c   :  { %1703 = vset.pattern.permute.xlu0 %v1838_v9 }
0x1ab6   :  { %v1210_v52 = vpop.permute.xlu0 %1209 }
0x1ab7   :  { %v2137_v53 = vmul.f32 %v1210_v52, %v1195_v46 }
0x1ab9   :  { %1230 = vrot.lane.b32.xlu1 %v2137_v53, %s1827_s3 }
0x1ac3   :  { %v1226_v55 = vpop.permute.xlu0 %1225 }
0x1ac4   :  { %v1228_v56 = vmul.f32 %v1226_v55, %v1940_v23 }
0x1b2b   :  { %v1231_v54 = vpop.permute.xlu1 %1230 }
0x1b2c   :  { %1655 = vmatmul.mubr.msk.f32.vlgmr.msra.gmra.mxu0 %vm95_vm4, %v1231_v54 }
0x1bec   :  { %v1300_v57 = vpop.f32.mrf.mxu0 }
0x1bed   :  { %v1301_v58 = vadd.f32 %v1300_v57, %v1228_v56 }
0x1bee   :  { %v1656_v59 = vpop.f32.mrf.mxu0 }
0x1bef   :  { %v1304_v60 = vadd.f32 %v1301_v58, %v1943_v27 }
0x1bf1   :  { %1744 = vtanh.f32 %v1304_v60 }
0x1bfe   :  { %v1745_v61 = vpop.eup %1744 }
0x1bff   :  { %1310 = vrot.lane.b32.xlu1 %v1745_v61, %s1826_s1  ;;  %v1306_v63 = vmul.f32 0.5, %v1745_v61 }
0x1c01   :  { %v1307_v0 = vadd.f32 0.5, %v1306_v63 }
0x1c03   :  { %v1308_v5 = vmul.f32 %v1307_v0, %v1206_v48 }
0x1c71   :  { %v1311_v3 = vpop.permute.xlu1 %1310 }
0x1c72   :  { %v1313_v4 = vmul.f32 %v1311_v3, %v1307_v0 }
0x1c74   :  { %1315 = vrot.lane.b32.xlu1 %v1313_v4, %s1827_s3 }
0x1ce6   :  { %v1316_v6 = vpop.permute.xlu1 %1315 }
0x1ce7   :  { %v2146_v7 = vadd.f32 %v1316_v6, %v1308_v5 }
0x1ce9   :  { %1746 = vtanh.f32 %v2146_v7 }
0x1cf6   :  { %v1747_v10 = vpop.eup %1746 }
0x1cf7   :  { %1321 = vrot.lane.b32.xlu0 %v1747_v10, %s1826_s1 }
0x1cfb   :  { %201 = vrot.lane.b32.xlu0 %v1464_v11, %s1839_s18 }
0x1d69   :  { %v1322_v13 = vpop.permute.xlu0 %1321 }
0x1d6a   :  { %v2153_v14 = vmul.f32 %v1322_v13, %v1307_v0 }
0x1d6c   :  { %1342 = vrot.lane.b32.xlu1 %v2153_v14, %s1827_s3 }
0x1d6d   :  { %v2157_v17 = vpop.permute.xlu0 %201 }
0x1d6e   :  { %v204_v20 = vmul.f32 %v2157_v17, %v1950_v43  ;;  %v317_v21 = vmul.f32 %v1971_v62, %v2157_v17  ;;  %v2175_v62 = vstv %s2240_s6  ;;  %v541_v37 = vmul.f32 %v2013_v45, %v2157_v17  ;;  %s1840_s6 = smov [#allocation8]  }
0x1d6f   :  { %v653_v38 = vmul.f32 %v2034_v2, %v2157_v17  ;;  %v877_v18 = vmul.f32 %v2076_v50, %v2157_v17  ;;  %v989_v58 = vmul.f32 %v2097_v8, %v2157_v17  ;;  %v1101_v59 = vmul.f32 %v2117_v36, %v2157_v17  ;;  %s1454_s20 = sshll.u32 %s1840_s6, 4  ;;  %s1455_s20 = int_to_ptr.vmem [resolvable:$true] %s1454_s20 }
0x1d70   :  { %206 = vrot.lane.b32.xlu1 %v204_v20, %s1827_s3  ;;  %v1213_v11 = vmul.f32 %v2137_v53, %v2157_v17  ;;  %v1325_v13 = vmul.f32 %v2153_v14, %v2157_v17  ;;  %s1792_s21 = scalar_lea.vmem %s1455_s20, 128  ;;  %p1797_p11 = scmp.lt.s32.totalorder %s1455_s20, %s1455_s20 }
0x1d71   :  { %p1793_p10 = scmp.ne.s32.totalorder %s1455_s20, %s1792_s21  ;;  %p1798_p12 = scmp.lt.s32.totalorder %s1792_s21, %s1792_s21 }
0x1d73   :  { %p1799_p13 = por %p1798_p12, %p1797_p11 }
0x1d74   :  { %1337 = vperm.xlu1 %1702, %v1896_v12   ;;  %v429_v12 = vmul.f32 %v1992_v24, %v2157_v17 }
0x1d75   :  { %p1800_p0 = pnand %p1799_p13, %p1793_p10 }
0x1d78   :  { %319 = vrot.lane.b32.xlu1 %v317_v21, %s1827_s3 }
0x1dde   :  { %v1343_v22 = vpop.permute.xlu1 %1342 }
0x1ddf   :  { %1666 = vmatmul.mubr.msk.f32.vlgmr.msra.gmra.mxu1 %vm95_vm4, %v1343_v22 }
0x1de2   :  { %v207_v25 = vpop.permute.xlu1 %206 }
0x1de3   :  { %v209_v26 = vsel %vm95_vm4, %v207_v25, 0.0 }
0x1de4   :  { %210 = vadd.xlane.f32.xlu0 %v209_v26 }
0x1def   :  { %v1338_v28 = vpop.permute.xlu1 %1337 }
0x1df0   :  { %v1340_v39 = vmul.f32 %v1338_v28, %v1940_v23 }
0x1df3   :  { %v320_v30 = vpop.permute.xlu1 %319 }
0x1df4   :  { %v322_v43 = vsel %vm95_vm4, %v320_v30, 0.0 }
0x1df5   :  { %323 = vadd.xlane.f32.xlu1 %v322_v43 }
0x1dfa   :  { %431 = vrot.lane.b32.xlu0 %v429_v12, %s1827_s3 }
0x1e6d   :  { %v211_v31 = vpop.xlane.xlu0 %210 }
0x1e6e   :  { %v213_v32 = vadd.f32 %v2175_v62, %v211_v31 }
0x1e70   :  { %215 = vst.msk [vmem:[#allocation8] sm:$0xff] %vm214_vm5, %v213_v32 }
0x1e71   :  { %v432_v33 = vpop.permute.xlu0 %431 }
0x1e72   :  { %v434_v34 = vsel %vm95_vm4, %v432_v33, 0.0 }
0x1e73   :  { %435 = vadd.xlane.f32.xlu1 %v434_v34 }
0x1e7e   :  { %v324_v35 = vpop.xlane.xlu1 %323 }
0x1e7f   :  { %v325_v24 = vadd.f32 %v324_v35, %v2175_v62 }
0x1e81   :  { %327 = vst.msk [vmem:[#allocation8] sm:$0xff] %vm326_vm6, %v325_v24 }
0x1e84   :  { %543 = vrot.lane.b32.xlu1 %v541_v37, %s1827_s3 }
0x1e88   :  { %655 = vrot.lane.b32.xlu1 %v653_v38, %s1827_s3 }
0x1e9f   :  { %v1412_v40 = vpop.f32.mrf.mxu1 }
0x1ea0   :  { %v1413_v15 = vadd.f32 %v1412_v40, %v1340_v39 }
0x1ea1   :  { %v1667_v41 = vpop.f32.mrf.mxu1 }
0x1ea2   :  { %v1416_v42 = vadd.f32 %v1413_v15, %v1943_v27  ;;  %v765_v27 = vmul.f32 %v2055_v29, %v2157_v17 }
0x1ea4   :  { %1748 = vtanh.f32 %v1416_v42 }
0x1eb1   :  { %v1749_v44 = vpop.eup %1748 }
0x1eb2   :  { %1422 = vrot.lane.b32.xlu0 %v1749_v44, %s1826_s1  ;;  %v1418_v55 = vmul.f32 0.5, %v1749_v44 }
0x1eb4   :  { %v1419_v56 = vadd.f32 0.5, %v1418_v55 }
0x1eb6   :  { %v1420_v8 = vmul.f32 %v1419_v56, %v2146_v7 }
0x1efc   :  { %v436_v45 = vpop.xlane.xlu1 %435 }
0x1efd   :  { %v437_v16 = vadd.f32 %v436_v45, %v2175_v62 }
0x1eff   :  { %439 = vst.msk [vmem:[#allocation8] sm:$0xff] %vm438_vm7, %v437_v16 }
0x1f00   :  { %v544_v46 = vpop.permute.xlu1 %543 }
0x1f01   :  { %v546_v2 = vsel %vm95_vm4, %v544_v46, 0.0 }
0x1f02   :  { %547 = vadd.xlane.f32.xlu0 %v546_v2 }
0x1f04   :  { %v656_v47 = vpop.permute.xlu1 %655 }
0x1f05   :  { %v658_v23 = vsel %vm95_vm4, %v656_v47, 0.0 }
0x1f06   :  { %659 = vadd.xlane.f32.xlu1 %v658_v23 }
0x1f18   :  { %767 = vrot.lane.b32.xlu0 %v765_v27, %s1827_s3 }
0x1f1c   :  { %879 = vrot.lane.b32.xlu0 %v877_v18, %s1827_s3 }
0x1f24   :  { %v1423_v1 = vpop.permute.xlu0 %1422 }
0x1f25   :  { %v1425_v57 = vmul.f32 %v1423_v1, %v1419_v56 }
0x1f8b   :  { %v548_v19 = vpop.xlane.xlu0 %547 }
0x1f8c   :  { %v549_v48 = vadd.f32 %v548_v19, %v2175_v62 }
0x1f8e   :  { %551 = vst.msk [vmem:[#allocation8] sm:$0xff] %vm550_vm8, %v549_v48 }
0x1f8f   :  { %v768_v49 = vpop.permute.xlu0 %767  ;;  %v660_v51 = vpop.xlane.xlu1 %659 }
0x1f90   :  { %v661_v52 = vadd.f32 %v660_v51, %v2175_v62  ;;  %v770_v29 = vsel %vm95_vm4, %v768_v49, 0.0 }
0x1f91   :  { %771 = vadd.xlane.f32.xlu1 %v770_v29 }
0x1f92   :  { %663 = vst.msk [vmem:[#allocation8] sm:$0xff] %vm662_vm9, %v661_v52 }
0x1f93   :  { %v880_v54 = vpop.permute.xlu0 %879 }
0x1f94   :  { %v882_v50 = vsel %vm95_vm4, %v880_v54, 0.0 }
0x1f95   :  { %883 = vadd.xlane.f32.xlu0 %v882_v50 }
0x1fa2   :  { %1427 = vrot.lane.b32.xlu1 %v1425_v57, %s1827_s3 }
0x1fa6   :  { %991 = vrot.lane.b32.xlu1 %v989_v58, %s1827_s3 }
0x1fab   :  { %1103 = vrot.lane.b32.xlu0 %v1101_v59, %s1827_s3 }
0x201a   :  { %v772_v60 = vpop.xlane.xlu1 %771 }
0x201b   :  { %v773_v61 = vadd.f32 %v772_v60, %v2175_v62 }
0x201d   :  { %775 = vst.msk [vmem:[#allocation8] sm:$0xff] %vm774_vm10, %v773_v61 }
0x201e   :  { %v884_v63 = vpop.xlane.xlu0 %883  ;;  %v1428_v0 = vpop.permute.xlu1 %1427 }
0x201f   :  { %v885_v3 = vadd.f32 %v884_v63, %v2175_v62  ;;  %v1430_v6 = vadd.f32 %v1428_v0, %v1420_v8 }
0x2021   :  { %887 = vst.msk [vmem:[#allocation8] sm:$0xff] %vm886_vm11, %v885_v3  ;;  %1750 = vtanh.f32 %v1430_v6 }
0x2022   :  { %v1104_v4 = vpop.permute.xlu0 %1103  ;;  %v992_v5 = vpop.permute.xlu1 %991 }
0x2023   :  { %v1106_v36 = vsel %vm95_vm4, %v1104_v4, 0.0  ;;  %v994_v9 = vsel %vm95_vm4, %v992_v5, 0.0 }
0x2024   :  { %1107 = vadd.xlane.f32.xlu0 %v1106_v36  ;;  %995 = vadd.xlane.f32.xlu1 %v994_v9 }
0x202e   :  { %v1751_v10 = vpop.eup %1750 }
0x2035   :  { %1433 = vrot.lane.b32.xlu1 %v1751_v10, %s1826_s1 }
0x2039   :  { %1215 = vrot.lane.b32.xlu1 %v1213_v11, %s1827_s3 }
0x203a   :  { %1327 = vrot.lane.b32.xlu0 %v1325_v13, %s1827_s3 }
0x20ad   :  { %v1108_v7 = vpop.xlane.xlu0 %1107  ;;  %v996_v20 = vpop.xlane.xlu1 %995 }
0x20ae   :  { %v1109_v21 = vadd.f32 %v1108_v7, %v2175_v62  ;;  %v997_v22 = vadd.f32 %v996_v20, %v2175_v62 }
0x20b0   :  { %999 = vst.msk [vmem:[#allocation8] sm:$0xff] %vm998_vm12, %v997_v22 }
0x20b1   :  { %v1328_v25 = vpop.permute.xlu0 %1327  ;;  %v1434_v26 = vpop.permute.xlu1 %1433  ;;  %1111 = vst.msk [vmem:[#allocation8] sm:$0xff] %vm1110_vm13, %v1109_v21 }
0x20b2   :  { %v1330_v53 = vsel %vm95_vm4, %v1328_v25, 0.0  ;;  %v1436_v30 = vmul.f32 %v1434_v26, %v1419_v56 }
0x20b3   :  { %1331 = vadd.xlane.f32.xlu0 %v1330_v53 }
0x20b4   :  { %v1437_v43 = vmul.f32 %v1436_v30, %v2157_v17 }
0x20b5   :  { %v1216_v14 = vpop.permute.xlu1 %1215 }
0x20b6   :  { %v1218_v28 = vsel %vm95_vm4, %v1216_v14, 0.0 }
0x20b7   :  { %1219 = vadd.xlane.f32.xlu1 %v1218_v28 }
0x20c8   :  { %1439 = vrot.lane.b32.xlu1 %v1437_v43, %s1827_s3 }
0x213c   :  { %v1332_v12 = vpop.xlane.xlu0 %1331 }
0x213d   :  { %v1333_v33 = vadd.f32 %v1332_v12, %v2175_v62 }
0x2140   :  { %v1220_v31 = vpop.xlane.xlu1 %1219 }
0x2141   :  { %v1221_v32 = vadd.f32 %v1220_v31, %v2175_v62 }
0x2143   :  { %1223 = vst.msk [vmem:[#allocation8] sm:$0xff] %vm1222_vm14, %v1221_v32 }
0x2144   :  { %v1440_v34 = vpop.permute.xlu1 %1439  ;;  %1335 = vst.msk [vmem:[#allocation8] sm:$0xff] %vm1334_vm15, %v1333_v33 }
0x2145   :  { %v1442_v35 = vsel %vm95_vm4, %v1440_v34, 0.0 }
0x2146   :  { %1443 = vadd.xlane.f32.xlu1 %v1442_v35 }
0x21cf   :  { %v1444_v24 = vpop.xlane.xlu1 %1443 }
0x21d0   :  { %v1445_v17 = vadd.f32 %v1444_v24, %v2175_v62 }
0x21d2   :  { %1447 = vst.msk [vmem:[#allocation8] sm:$0xff] %vm1446_vm0, %v1445_v17 }
0x21d3   :  { %1803 = shalt.err (!%p1800_p0)
}
0x21d4   :  { %1457 = dma.vmem_to_hbm [thread:$0]  %s1455_s20, 128, %s2241_s7, [#allocation5]  }
0x21d5   :  { %1816 = dma.done.wait [#allocation5], 128  }
0x21d6   :  { %1817 = vsyncadd [#allocation5], 4294967168 }
0x21d7   :  { %1461 = vsyncpa [#allocation4], 1 }
0x21d8   :  { %1462 = vsyncpa [#allocation7], 1 }
0x21d9   :  { %1463 = vsyncpa [#allocation5], 1 }

</bundles_post_ra>
